<compile_context>
chip_gen: v6e
topology: v6e:2x2x1
jax: 0.10.0
libtpu: 0.0.40
codegen_flags: <defaults>
</compile_context>

<pallas_src>
import functools
import math

import jax
import jax.numpy as jnp
from jax.experimental import pallas as pl
from jax.experimental.pallas import tpu as pltpu


NEG_INF = -1e9

CFG = dict(vocab_size=100, hidden=32, n_heads=2, n_layers=2,
           intermediate=64, max_pos=64, type_vocab=2, eps=1e-12)


# ----------------------------------------------------------------------------
# in-kernel helpers
# ----------------------------------------------------------------------------

def _layernorm_f32(x, g, b, eps):
    mean = jnp.mean(x, axis=-1, keepdims=True)
    c = x - mean
    var = jnp.mean(c * c, axis=-1, keepdims=True)
    return c * jax.lax.rsqrt(var + eps) * g + b


# ----------------------------------------------------------------------------
# the fused forward kernel: emb-LN -> L transformer layers -> head
# ----------------------------------------------------------------------------

def _electra_fwd_kernel(emb_ref, qid_ref, kid_ref,
                        embg_ref, embb_ref,
                        wqkv_ref, bqkv_ref, wo_ref, bo_ref,
                        ln1g_ref, ln1b_ref, w1_ref, b1_ref, w2_ref, b2_ref,
                        ln2g_ref, ln2b_ref,
                        wout_ref, bout_ref, wcls_ref, bcls_ref,
                        o_ref, *, n_heads, head_dim, eps):
    f32, bf16 = jnp.float32, jnp.bfloat16
    M, H = emb_ref.shape
    n_layers = wqkv_ref.shape[0]

    # ---- embedding LayerNorm (fused into this kernel, f32 math) ------------
    x = _layernorm_f32(emb_ref[...].astype(f32), embg_ref[...], embb_ref[...], eps)

    # ---- block-diagonal (per-sequence) + causal + key-padding mask ---------
    # qid: (M,1) sequence id of each query row; kid: (1,M) sequence id of each
    # key column, pre-set to -1 for padded keys so they never match a query id.
    row = jax.lax.broadcasted_iota(jnp.int32, (M, M), 0)
    col = jax.lax.broadcasted_iota(jnp.int32, (M, M), 1)
    allowed = (qid_ref[...] == kid_ref[...]) & (col <= row)          # (M, M)

    # ---- transformer encoder layers (static unroll over stacked weights) ---
    for l in range(n_layers):
        # fused Q/K/V projection: one bf16 MXU matmul over all B*S rows.
        # (the 1/sqrt(Dh) scale is already folded into the q columns/bias.)
        qkv = jnp.dot(x.astype(bf16), wqkv_ref[l],
                      preferred_element_type=f32) + bqkv_ref[l]       # (M, 3H)
        wo_l = wo_ref[l]                                              # (H, H) bf16
        attn_out = bo_ref[l]                                          # (1, H) f32

        # TODO(synk): at real head counts (12-16) switch to a heads-leading
        # batched dot_general instead of this static per-head unrolled loop.
        for h in range(n_heads):
            lo = h * head_dim
            qh = qkv[:, lo:lo + head_dim].astype(bf16)                # (M, Dh)
            kh = qkv[:, H + lo:H + lo + head_dim].astype(bf16)
            vh = qkv[:, 2 * H + lo:2 * H + lo + head_dim].astype(bf16)

            s = jax.lax.dot_general(qh, kh, (((1,), (1,)), ((), ())),
                                    preferred_element_type=f32)       # (M, M)
            s = jnp.where(allowed, s, NEG_INF)
            m = jnp.max(s, axis=-1, keepdims=True)
            e = jnp.exp(s - m)
            p = e * pl.reciprocal(jnp.sum(e, axis=-1, keepdims=True), approx=True)

            ctx = jnp.dot(p.astype(bf16), vh,
                          preferred_element_type=f32)                 # (M, Dh)
            # fold the output projection per head: ctx @ wo == sum_h ctx_h @ wo_h
            attn_out = attn_out + jnp.dot(ctx.astype(bf16),
                                          wo_l[lo:lo + head_dim, :],
                                          preferred_element_type=f32)

        h1 = _layernorm_f32(attn_out + x, ln1g_ref[l], ln1b_ref[l], eps)

        ff = jnp.dot(h1.astype(bf16), w1_ref[l],
                     preferred_element_type=f32) + b1_ref[l]
        # TODO(synk): HF ELECTRA uses erf-GELU; tanh-approx GELU used here.
        ff = jax.nn.gelu(ff)
        ff2 = jnp.dot(ff.astype(bf16), w2_ref[l],
                      preferred_element_type=f32) + b2_ref[l]

        x = _layernorm_f32(ff2 + h1, ln2g_ref[l], ln2b_ref[l], eps)

    # ---- discriminator head: relu(x @ W_out + b_out) . w_cls + b_cls -------
    hh = jnp.dot(x.astype(bf16), wout_ref[...],
                 preferred_element_type=f32) + bout_ref[...]          # (M, H)
    hh = jnp.maximum(hh, 0.0)
    # lane-dense logits: (1, M) via w_cls (1,H) x hh^T on the MXU, instead of
    # an (M, 1) store that would hit 1-of-128-lane masked vst.
    y = jax.lax.dot_general(wcls_ref[...], hh.astype(bf16),
                            (((1,), (1,)), ((), ())),
                            preferred_element_type=f32)               # (1, M)
    o_ref[...] = (y + bcls_ref[0]).astype(o_ref.dtype)


# ----------------------------------------------------------------------------
# wrapper: embeddings (XLA gathers) + one pallas_call
# ----------------------------------------------------------------------------

def electra_discriminator_forward(prepared, input_ids, attention_mask,
                                  token_type_ids=None, cfg=CFG):
    B, S = input_ids.shape
    H = prepared["word_emb"].shape[1]
    nH = cfg["n_heads"]
    Dh = H // nH
    M = B * S
    L = prepared["wqkv"].shape[0]
    I = prepared["w1"].shape[2]
    if token_type_ids is None:
        token_type_ids = jnp.zeros_like(input_ids)

    # --- embedding gathers stay in XLA glue; everything after is one kernel --
    pos_ids = jnp.arange(S)
    emb = (jnp.take(prepared["word_emb"], input_ids, axis=0)
           + jnp.take(prepared["pos_emb"], pos_ids, axis=0)[None, :, :]
           + jnp.take(prepared["type_emb"], token_type_ids, axis=0))
    emb2d = emb.reshape(M, H)                                # flatten (B,S,H)->(M,H)

    # O(M) mask/id vectors: per-row sequence id and per-key sequence id
    # (padded keys remapped to -1).  The (M,M) mask is built in-kernel.
    seq_ids = jnp.arange(M, dtype=jnp.int32) // S
    qry_ids = seq_ids.reshape(M, 1)
    key_ids = jnp.where(attention_mask.reshape(M) > 0, seq_ids, -1).reshape(1, M)

    def full(shape):
        n = len(shape)
        return pl.BlockSpec(shape, lambda i, _n=n: (0,) * _n)

    kernel = functools.partial(_electra_fwd_kernel, n_heads=nH, head_dim=Dh,
                               eps=cfg["eps"])

    # TODO(synk): at real ELECTRA size, split back into one pallas_call per
    # layer with a row-tile grid marked "parallel" (v7x megacore), S-tiled
    # activations, pipeline_mode=pl.Buffered(1) on grid-invariant weight blocks
    # and an explicit vmem_limit_bytes (v7x has only 64 MiB physical VMEM).
    logits_row = pl.pallas_call(
        kernel,
        out_shape=jax.ShapeDtypeStruct((1, M), jnp.float32),
        grid=(1,),
        in_specs=[
            full((M, H)),            # emb2d
            full((M, 1)),            # qry_ids
            full((1, M)),            # key_ids
            full((1, H)),            # emb_ln_g
            full((1, H)),            # emb_ln_b
            full((L, H, 3 * H)),     # wqkv  (bf16, scale folded in)
            full((L, 1, 3 * H)),     # bqkv
            full((L, H, H)),         # wo    (bf16)
            full((L, 1, H)),         # bo
            full((L, 1, H)),         # ln1_g
            full((L, 1, H)),         # ln1_b
            full((L, H, I)),         # w1    (bf16)
            full((L, 1, I)),         # b1
            full((L, I, H)),         # w2    (bf16)
            full((L, 1, H)),         # b2
            full((L, 1, H)),         # ln2_g
            full((L, 1, H)),         # ln2_b
            full((H, H)),            # out_linear W (bf16)
            full((1, H)),            # out_linear b
            full((1, H)),            # classifier w row (bf16)
            pl.BlockSpec(memory_space=pltpu.MemorySpace.SMEM),   # classifier bias
        ],
        out_specs=full((1, M)),
    )(emb2d, qry_ids, key_ids,
      prepared["emb_ln_g"], prepared["emb_ln_b"],
      prepared["wqkv"], prepared["bqkv"], prepared["wo"], prepared["bo"],
      prepared["ln1_g"], prepared["ln1_b"],
      prepared["w1"], prepared["b1"], prepared["w2"], prepared["b2"],
      prepared["ln2_g"], prepared["ln2_b"],
      prepared["w_out"], prepared["b_out"],
      prepared["w_cls"], prepared["b_cls"])

    return logits_row.reshape(B, S)


# ----------------------------------------------------------------------------
# parameters: raw init + ONE-TIME preprocessing (hoisted out of the forward)
# ----------------------------------------------------------------------------

def init_params(key, cfg):
    H, I = cfg["hidden"], cfg["intermediate"]
    keys = iter(jax.random.split(key, 64))
    init = lambda shp: (0.02 * jax.random.normal(next(keys), shp)).astype(jnp.float32)
    p = {
        "word_emb": init((cfg["vocab_size"], H)),
        "pos_emb": init((cfg["max_pos"], H)),
        "type_emb": init((cfg["type_vocab"], H)),
        "emb_ln_g": jnp.ones((H,), jnp.float32),
        "emb_ln_b": jnp.zeros((H,), jnp.float32),
        "layers": [],
        "out_linear_w": init((H, H)),
        "out_linear_b": jnp.zeros((H,), jnp.float32),
        "classifier_w": init((H, 1)),
        "classifier_b": jnp.zeros((1,), jnp.float32),
    }
    for _ in range(cfg["n_layers"]):
        p["layers"].append({
            "wq": init((H, H)), "bq": jnp.zeros((H,), jnp.float32),
            "wk": init((H, H)), "bk": jnp.zeros((H,), jnp.float32),
            "wv": init((H, H)), "bv": jnp.zeros((H,), jnp.float32),
            "wo": init((H, H)), "bo": jnp.zeros((H,), jnp.float32),
            "ln1_g": jnp.ones((H,), jnp.float32), "ln1_b": jnp.zeros((H,), jnp.float32),
            "w1": init((H, I)), "b1": jnp.zeros((I,), jnp.float32),
            "w2": init((I, H)), "b2": jnp.zeros((H,), jnp.float32),
            "ln2_g": jnp.ones((H,), jnp.float32), "ln2_b": jnp.zeros((H,), jnp.float32),
        })
    return p


def prepare_params(p, cfg):
    """One-time weight preprocessing (NOT re-run per forward): fuse Q/K/V into
    a single (H,3H) matmul, fold 1/sqrt(Dh) into wq/bq, cast MXU operands to
    bf16, stack the per-layer weights on a leading layer axis."""
    H = cfg["hidden"]
    scale = 1.0 / math.sqrt(H // cfg["n_heads"])
    bf = lambda w: w.astype(jnp.bfloat16)

    def stack(fn):
        return jnp.stack([fn(l) for l in p["layers"]])

    return {
        "word_emb": p["word_emb"],
        "pos_emb": p["pos_emb"],
        "type_emb": p["type_emb"],
        "emb_ln_g": p["emb_ln_g"].reshape(1, H),
        "emb_ln_b": p["emb_ln_b"].reshape(1, H),
        "wqkv": stack(lambda l: bf(jnp.concatenate(
            [l["wq"] * scale, l["wk"], l["wv"]], axis=1))),
        "bqkv": stack(lambda l: jnp.concatenate(
            [l["bq"] * scale, l["bk"], l["bv"]]).reshape(1, 3 * H)),
        "wo": stack(lambda l: bf(l["wo"])),
        "bo": stack(lambda l: l["bo"].reshape(1, H)),
        "ln1_g": stack(lambda l: l["ln1_g"].reshape(1, H)),
        "ln1_b": stack(lambda l: l["ln1_b"].reshape(1, H)),
        "w1": stack(lambda l: bf(l["w1"])),
        "b1": stack(lambda l: l["b1"].reshape(1, -1)),
        "w2": stack(lambda l: bf(l["w2"])),
        "b2": stack(lambda l: l["b2"].reshape(1, H)),
        "ln2_g": stack(lambda l: l["ln2_g"].reshape(1, H)),
        "ln2_b": stack(lambda l: l["ln2_b"].reshape(1, H)),
        "w_out": bf(p["out_linear_w"]),
        "b_out": p["out_linear_b"].reshape(1, H),
        "w_cls": bf(p["classifier_w"].reshape(1, H)),
        "b_cls": p["classifier_b"].reshape(1,),
    }


# ----------------------------------------------------------------------------
# Main
# ----------------------------------------------------------------------------

if __name__ == "__main__":
    key = jax.random.PRNGKey(0)
    k_param, k_ids = jax.random.split(key)

    B, S = 2, 8
    params = init_params(k_param, CFG)
    prepared = prepare_params(params, CFG)   # one-time weight fusion / bf16 cast

    input_ids = jax.random.randint(k_ids, (B, S), 0, CFG["vocab_size"],
                                   dtype=jnp.int32)
    attention_mask = jnp.ones((B, S), jnp.int32).at[1, 6:].set(0)  # pad tail of batch 1
    token_type_ids = jnp.zeros((B, S), jnp.int32)

    forward = jax.jit(electra_discriminator_forward)
    logits = forward(prepared, input_ids, attention_mask, token_type_ids)
    logits = jax.block_until_ready(logits)

    assert logits.shape == (B, S), logits.shape
    assert logits.dtype == jnp.float32
    assert bool(jnp.all(jnp.isfinite(logits)))
    print("KERNEL_OK")
</pallas_src>

<mosaic_0001>
module attributes {stable_mosaic.version = 11 : i64} {
  func.func @_electra_fwd_kernel(%arg0: i32, %arg1: memref<16x32xf32, #tpu.memory_space<vmem>>, %arg2: memref<16x1xi32, #tpu.memory_space<vmem>>, %arg3: memref<1x16xi32, #tpu.memory_space<vmem>>, %arg4: memref<1x32xf32, #tpu.memory_space<vmem>>, %arg5: memref<1x32xf32, #tpu.memory_space<vmem>>, %arg6: memref<2x32x96xbf16, #tpu.memory_space<vmem>>, %arg7: memref<2x1x96xf32, #tpu.memory_space<vmem>>, %arg8: memref<2x32x32xbf16, #tpu.memory_space<vmem>>, %arg9: memref<2x1x32xf32, #tpu.memory_space<vmem>>, %arg10: memref<2x1x32xf32, #tpu.memory_space<vmem>>, %arg11: memref<2x1x32xf32, #tpu.memory_space<vmem>>, %arg12: memref<2x32x64xbf16, #tpu.memory_space<vmem>>, %arg13: memref<2x1x64xf32, #tpu.memory_space<vmem>>, %arg14: memref<2x64x32xbf16, #tpu.memory_space<vmem>>, %arg15: memref<2x1x32xf32, #tpu.memory_space<vmem>>, %arg16: memref<2x1x32xf32, #tpu.memory_space<vmem>>, %arg17: memref<2x1x32xf32, #tpu.memory_space<vmem>>, %arg18: memref<32x32xbf16, #tpu.memory_space<vmem>>, %arg19: memref<1x32xf32, #tpu.memory_space<vmem>>, %arg20: memref<1x32xbf16, #tpu.memory_space<vmem>>, %arg21: memref<1xf32, #tpu.memory_space<smem>>, %arg22: memref<1x16xf32, #tpu.memory_space<vmem>>) attributes {dimension_semantics = [#tpu.dimension_semantics<arbitrary>], iteration_bounds = array<i64: 1>, scalar_prefetch = 0 : i64, scratch_operands = 0 : i64, tpu.core_type = #tpu.core_type<tc>, window_params = [{pipeline_mode = #tpu.pipeline_mode<synchronous>, transform_indices = @transform_0, window_bounds = array<i64: 16, 32>}, {pipeline_mode = #tpu.pipeline_mode<synchronous>, transform_indices = @transform_1, window_bounds = array<i64: 16, 1>}, {pipeline_mode = #tpu.pipeline_mode<synchronous>, transform_indices = @transform_2, window_bounds = array<i64: 1, 16>}, {pipeline_mode = #tpu.pipeline_mode<synchronous>, transform_indices = @transform_3, window_bounds = array<i64: 1, 32>}, {pipeline_mode = #tpu.pipeline_mode<synchronous>, transform_indices = @transform_4, window_bounds = array<i64: 1, 32>}, {pipeline_mode = #tpu.pipeline_mode<synchronous>, transform_indices = @transform_5, window_bounds = array<i64: 2, 32, 96>}, {pipeline_mode = #tpu.pipeline_mode<synchronous>, transform_indices = @transform_6, window_bounds = array<i64: 2, 1, 96>}, {pipeline_mode = #tpu.pipeline_mode<synchronous>, transform_indices = @transform_7, window_bounds = array<i64: 2, 32, 32>}, {pipeline_mode = #tpu.pipeline_mode<synchronous>, transform_indices = @transform_8, window_bounds = array<i64: 2, 1, 32>}, {pipeline_mode = #tpu.pipeline_mode<synchronous>, transform_indices = @transform_9, window_bounds = array<i64: 2, 1, 32>}, {pipeline_mode = #tpu.pipeline_mode<synchronous>, transform_indices = @transform_10, window_bounds = array<i64: 2, 1, 32>}, {pipeline_mode = #tpu.pipeline_mode<synchronous>, transform_indices = @transform_11, window_bounds = array<i64: 2, 32, 64>}, {pipeline_mode = #tpu.pipeline_mode<synchronous>, transform_indices = @transform_12, window_bounds = array<i64: 2, 1, 64>}, {pipeline_mode = #tpu.pipeline_mode<synchronous>, transform_indices = @transform_13, window_bounds = array<i64: 2, 64, 32>}, {pipeline_mode = #tpu.pipeline_mode<synchronous>, transform_indices = @transform_14, window_bounds = array<i64: 2, 1, 32>}, {pipeline_mode = #tpu.pipeline_mode<synchronous>, transform_indices = @transform_15, window_bounds = array<i64: 2, 1, 32>}, {pipeline_mode = #tpu.pipeline_mode<synchronous>, transform_indices = @transform_16, window_bounds = array<i64: 2, 1, 32>}, {pipeline_mode = #tpu.pipeline_mode<synchronous>, transform_indices = @transform_17, window_bounds = array<i64: 32, 32>}, {pipeline_mode = #tpu.pipeline_mode<synchronous>, transform_indices = @transform_18, window_bounds = array<i64: 1, 32>}, {pipeline_mode = #tpu.pipeline_mode<synchronous>, transform_indices = @transform_19, window_bounds = array<i64: 1, 32>}, {transform_indices = @transform_20, window_bounds = array<i64: 1>}, {pipeline_mode = #tpu.pipeline_mode<synchronous>, transform_indices = @transform_21, window_bounds = array<i64: 1, 16>}]} {
    %c0 = arith.constant 0 : index
    %c0_0 = arith.constant 0 : index
    %0 = vector.load %arg1[%c0, %c0_0] : memref<16x32xf32, #tpu.memory_space<vmem>>, vector<16x32xf32>
    %c0_1 = arith.constant 0 : index
    %c0_2 = arith.constant 0 : index
    %1 = vector.load %arg4[%c0_1, %c0_2] : memref<1x32xf32, #tpu.memory_space<vmem>>, vector<1x32xf32>
    %c0_3 = arith.constant 0 : index
    %c0_4 = arith.constant 0 : index
    %2 = vector.load %arg5[%c0_3, %c0_4] : memref<1x32xf32, #tpu.memory_space<vmem>>, vector<1x32xf32>
    %cst = arith.constant dense<0.000000e+00> : vector<16xf32>
    %3 = vector.multi_reduction <add>, %0, %cst [1] : vector<16x32xf32> to vector<16xf32>
    %4 = vector.shape_cast %3 : vector<16xf32> to vector<16x1xf32>
    %cst_5 = arith.constant 3.200000e+01 : f32
    %5 = vector.broadcast %cst_5 : f32 to vector<16x1xf32>
    %6 = arith.divf %4, %5 : vector<16x1xf32>
    %7 = vector.broadcast %6 : vector<16x1xf32> to vector<16x32xf32>
    %8 = arith.subf %0, %7 : vector<16x32xf32>
    %9 = arith.mulf %8, %8 : vector<16x32xf32>
    %cst_6 = arith.constant dense<0.000000e+00> : vector<16xf32>
    %10 = vector.multi_reduction <add>, %9, %cst_6 [1] : vector<16x32xf32> to vector<16xf32>
    %11 = vector.shape_cast %10 : vector<16xf32> to vector<16x1xf32>
    %cst_7 = arith.constant 3.200000e+01 : f32
    %12 = vector.broadcast %cst_7 : f32 to vector<16x1xf32>
    %13 = arith.divf %11, %12 : vector<16x1xf32>
    %cst_8 = arith.constant 9.99999996E-13 : f32
    %14 = vector.broadcast %cst_8 : f32 to vector<16x1xf32>
    %15 = arith.addf %13, %14 : vector<16x1xf32>
    %16 = math.rsqrt %15 : vector<16x1xf32>
    %17 = vector.broadcast %16 : vector<16x1xf32> to vector<16x32xf32>
    %18 = arith.mulf %8, %17 : vector<16x32xf32>
    %19 = vector.broadcast %1 : vector<1x32xf32> to vector<16x32xf32>
    %20 = arith.mulf %18, %19 : vector<16x32xf32>
    %21 = vector.broadcast %2 : vector<1x32xf32> to vector<16x32xf32>
    %22 = arith.addf %20, %21 : vector<16x32xf32>
    %23 = tpu.iota {dimensions = array<i32: 0>} : vector<16x16xi32>
    %24 = tpu.iota {dimensions = array<i32: 1>} : vector<16x16xi32>
    %c0_9 = arith.constant 0 : index
    %c0_10 = arith.constant 0 : index
    %25 = vector.load %arg2[%c0_9, %c0_10] : memref<16x1xi32, #tpu.memory_space<vmem>>, vector<16x1xi32>
    %c0_11 = arith.constant 0 : index
    %c0_12 = arith.constant 0 : index
    %26 = vector.load %arg3[%c0_11, %c0_12] : memref<1x16xi32, #tpu.memory_space<vmem>>, vector<1x16xi32>
    %27 = vector.broadcast %25 : vector<16x1xi32> to vector<16x16xi32>
    %28 = vector.broadcast %26 : vector<1x16xi32> to vector<16x16xi32>
    %29 = arith.cmpi eq, %27, %28 : vector<16x16xi32>
    %30 = arith.cmpi sle, %24, %23 : vector<16x16xi32>
    %31 = arith.andi %29, %30 : vector<16x16xi1>
    %32 = arith.truncf %22 : vector<16x32xf32> to vector<16x32xbf16>
    %c0_13 = arith.constant 0 : index
    %c0_14 = arith.constant 0 : index
    %c0_15 = arith.constant 0 : index
    %33 = vector.load %arg6[%c0_13, %c0_14, %c0_15] : memref<2x32x96xbf16, #tpu.memory_space<vmem>>, vector<1x32x96xbf16>
    %34 = vector.shape_cast %33 : vector<1x32x96xbf16> to vector<32x96xbf16>
    %cst_16 = arith.constant dense<0.000000e+00> : vector<16x96xf32>
    %35 = tpu.matmul %32, %34, %cst_16 {dimension_numbers = #tpu.dot_dimension_numbers<[1], [0], [0], [1], [0, 0, 1, 1], [], []>} : vector<16x32xbf16>, vector<32x96xbf16>, vector<16x96xf32> -> vector<16x96xf32>
    %c0_17 = arith.constant 0 : index
    %c0_18 = arith.constant 0 : index
    %c0_19 = arith.constant 0 : index
    %36 = vector.load %arg7[%c0_17, %c0_18, %c0_19] : memref<2x1x96xf32, #tpu.memory_space<vmem>>, vector<1x1x96xf32>
    %37 = vector.shape_cast %36 : vector<1x1x96xf32> to vector<1x96xf32>
    %38 = vector.broadcast %37 : vector<1x96xf32> to vector<16x96xf32>
    %39 = arith.addf %35, %38 : vector<16x96xf32>
    %c0_20 = arith.constant 0 : index
    %c0_21 = arith.constant 0 : index
    %c0_22 = arith.constant 0 : index
    %40 = vector.load %arg8[%c0_20, %c0_21, %c0_22] : memref<2x32x32xbf16, #tpu.memory_space<vmem>>, vector<1x32x32xbf16>
    %41 = vector.shape_cast %40 : vector<1x32x32xbf16> to vector<32x32xbf16>
    %c0_23 = arith.constant 0 : index
    %c0_24 = arith.constant 0 : index
    %c0_25 = arith.constant 0 : index
    %42 = vector.load %arg9[%c0_23, %c0_24, %c0_25] : memref<2x1x32xf32, #tpu.memory_space<vmem>>, vector<1x1x32xf32>
    %43 = vector.shape_cast %42 : vector<1x1x32xf32> to vector<1x32xf32>
    %44 = vector.extract_strided_slice %39 {offsets = [0, 0], sizes = [16, 16], strides = [1, 1]} : vector<16x96xf32> to vector<16x16xf32>
    %45 = arith.truncf %44 : vector<16x16xf32> to vector<16x16xbf16>
    %46 = vector.extract_strided_slice %39 {offsets = [0, 32], sizes = [16, 16], strides = [1, 1]} : vector<16x96xf32> to vector<16x16xf32>
    %47 = arith.truncf %46 : vector<16x16xf32> to vector<16x16xbf16>
    %48 = vector.extract_strided_slice %39 {offsets = [0, 64], sizes = [16, 16], strides = [1, 1]} : vector<16x96xf32> to vector<16x16xf32>
    %49 = arith.truncf %48 : vector<16x16xf32> to vector<16x16xbf16>
    %cst_26 = arith.constant dense<0.000000e+00> : vector<16x16xf32>
    %50 = tpu.matmul %45, %47, %cst_26 {dimension_numbers = #tpu.dot_dimension_numbers<[1], [1], [0], [0], [0, 0, 1, 0], [], []>} : vector<16x16xbf16>, vector<16x16xbf16>, vector<16x16xf32> -> vector<16x16xf32>
    %cst_27 = arith.constant -1.000000e+09 : f32
    %51 = vector.broadcast %cst_27 : f32 to vector<16x16xf32>
    %52 = arith.select %31, %50, %51 : vector<16x16xi1>, vector<16x16xf32>
    %cst_28 = arith.constant dense<0xFF800000> : vector<16xf32>
    %53 = vector.multi_reduction <maximumf>, %52, %cst_28 [1] : vector<16x16xf32> to vector<16xf32>
    %54 = vector.shape_cast %53 : vector<16xf32> to vector<16x1xf32>
    %55 = vector.broadcast %54 : vector<16x1xf32> to vector<16x16xf32>
    %56 = arith.subf %52, %55 : vector<16x16xf32>
    %57 = math.exp %56 : vector<16x16xf32>
    %cst_29 = arith.constant dense<0.000000e+00> : vector<16xf32>
    %58 = vector.multi_reduction <add>, %57, %cst_29 [1] : vector<16x16xf32> to vector<16xf32>
    %59 = vector.shape_cast %58 : vector<16xf32> to vector<16x1xf32>
    %60 = tpu.reciprocal %59 {approx = true} : vector<16x1xf32> -> vector<16x1xf32>
    %61 = vector.broadcast %60 : vector<16x1xf32> to vector<16x16xf32>
    %62 = arith.mulf %57, %61 : vector<16x16xf32>
    %63 = arith.truncf %62 : vector<16x16xf32> to vector<16x16xbf16>
    %cst_30 = arith.constant dense<0.000000e+00> : vector<16x16xf32>
    %64 = tpu.matmul %63, %49, %cst_30 {dimension_numbers = #tpu.dot_dimension_numbers<[1], [0], [0], [1], [0, 0, 1, 1], [], []>} : vector<16x16xbf16>, vector<16x16xbf16>, vector<16x16xf32> -> vector<16x16xf32>
    %65 = arith.truncf %64 : vector<16x16xf32> to vector<16x16xbf16>
    %66 = vector.extract_strided_slice %41 {offsets = [0, 0], sizes = [16, 32], strides = [1, 1]} : vector<32x32xbf16> to vector<16x32xbf16>
    %cst_31 = arith.constant dense<0.000000e+00> : vector<16x32xf32>
    %67 = tpu.matmul %65, %66, %cst_31 {dimension_numbers = #tpu.dot_dimension_numbers<[1], [0], [0], [1], [0, 0, 1, 1], [], []>} : vector<16x16xbf16>, vector<16x32xbf16>, vector<16x32xf32> -> vector<16x32xf32>
    %68 = vector.broadcast %43 : vector<1x32xf32> to vector<16x32xf32>
    %69 = arith.addf %68, %67 : vector<16x32xf32>
    %70 = vector.extract_strided_slice %39 {offsets = [0, 16], sizes = [16, 16], strides = [1, 1]} : vector<16x96xf32> to vector<16x16xf32>
    %71 = arith.truncf %70 : vector<16x16xf32> to vector<16x16xbf16>
    %72 = vector.extract_strided_slice %39 {offsets = [0, 48], sizes = [16, 16], strides = [1, 1]} : vector<16x96xf32> to vector<16x16xf32>
    %73 = arith.truncf %72 : vector<16x16xf32> to vector<16x16xbf16>
    %74 = vector.extract_strided_slice %39 {offsets = [0, 80], sizes = [16, 16], strides = [1, 1]} : vector<16x96xf32> to vector<16x16xf32>
    %75 = arith.truncf %74 : vector<16x16xf32> to vector<16x16xbf16>
    %cst_32 = arith.constant dense<0.000000e+00> : vector<16x16xf32>
    %76 = tpu.matmul %71, %73, %cst_32 {dimension_numbers = #tpu.dot_dimension_numbers<[1], [1], [0], [0], [0, 0, 1, 0], [], []>} : vector<16x16xbf16>, vector<16x16xbf16>, vector<16x16xf32> -> vector<16x16xf32>
    %cst_33 = arith.constant -1.000000e+09 : f32
    %77 = vector.broadcast %cst_33 : f32 to vector<16x16xf32>
    %78 = arith.select %31, %76, %77 : vector<16x16xi1>, vector<16x16xf32>
    %cst_34 = arith.constant dense<0xFF800000> : vector<16xf32>
    %79 = vector.multi_reduction <maximumf>, %78, %cst_34 [1] : vector<16x16xf32> to vector<16xf32>
    %80 = vector.shape_cast %79 : vector<16xf32> to vector<16x1xf32>
    %81 = vector.broadcast %80 : vector<16x1xf32> to vector<16x16xf32>
    %82 = arith.subf %78, %81 : vector<16x16xf32>
    %83 = math.exp %82 : vector<16x16xf32>
    %cst_35 = arith.constant dense<0.000000e+00> : vector<16xf32>
    %84 = vector.multi_reduction <add>, %83, %cst_35 [1] : vector<16x16xf32> to vector<16xf32>
    %85 = vector.shape_cast %84 : vector<16xf32> to vector<16x1xf32>
    %86 = tpu.reciprocal %85 {approx = true} : vector<16x1xf32> -> vector<16x1xf32>
    %87 = vector.broadcast %86 : vector<16x1xf32> to vector<16x16xf32>
    %88 = arith.mulf %83, %87 : vector<16x16xf32>
    %89 = arith.truncf %88 : vector<16x16xf32> to vector<16x16xbf16>
    %cst_36 = arith.constant dense<0.000000e+00> : vector<16x16xf32>
    %90 = tpu.matmul %89, %75, %cst_36 {dimension_numbers = #tpu.dot_dimension_numbers<[1], [0], [0], [1], [0, 0, 1, 1], [], []>} : vector<16x16xbf16>, vector<16x16xbf16>, vector<16x16xf32> -> vector<16x16xf32>
    %91 = arith.truncf %90 : vector<16x16xf32> to vector<16x16xbf16>
    %92 = vector.extract_strided_slice %41 {offsets = [16, 0], sizes = [16, 32], strides = [1, 1]} : vector<32x32xbf16> to vector<16x32xbf16>
    %cst_37 = arith.constant dense<0.000000e+00> : vector<16x32xf32>
    %93 = tpu.matmul %91, %92, %cst_37 {dimension_numbers = #tpu.dot_dimension_numbers<[1], [0], [0], [1], [0, 0, 1, 1], [], []>} : vector<16x16xbf16>, vector<16x32xbf16>, vector<16x32xf32> -> vector<16x32xf32>
    %94 = arith.addf %69, %93 : vector<16x32xf32>
    %95 = arith.addf %94, %22 : vector<16x32xf32>
    %c0_38 = arith.constant 0 : index
    %c0_39 = arith.constant 0 : index
    %c0_40 = arith.constant 0 : index
    %96 = vector.load %arg10[%c0_38, %c0_39, %c0_40] : memref<2x1x32xf32, #tpu.memory_space<vmem>>, vector<1x1x32xf32>
    %97 = vector.shape_cast %96 : vector<1x1x32xf32> to vector<1x32xf32>
    %c0_41 = arith.constant 0 : index
    %c0_42 = arith.constant 0 : index
    %c0_43 = arith.constant 0 : index
    %98 = vector.load %arg11[%c0_41, %c0_42, %c0_43] : memref<2x1x32xf32, #tpu.memory_space<vmem>>, vector<1x1x32xf32>
    %99 = vector.shape_cast %98 : vector<1x1x32xf32> to vector<1x32xf32>
    %cst_44 = arith.constant dense<0.000000e+00> : vector<16xf32>
    %100 = vector.multi_reduction <add>, %95, %cst_44 [1] : vector<16x32xf32> to vector<16xf32>
    %101 = vector.shape_cast %100 : vector<16xf32> to vector<16x1xf32>
    %cst_45 = arith.constant 3.200000e+01 : f32
    %102 = vector.broadcast %cst_45 : f32 to vector<16x1xf32>
    %103 = arith.divf %101, %102 : vector<16x1xf32>
    %104 = vector.broadcast %103 : vector<16x1xf32> to vector<16x32xf32>
    %105 = arith.subf %95, %104 : vector<16x32xf32>
    %106 = arith.mulf %105, %105 : vector<16x32xf32>
    %cst_46 = arith.constant dense<0.000000e+00> : vector<16xf32>
    %107 = vector.multi_reduction <add>, %106, %cst_46 [1] : vector<16x32xf32> to vector<16xf32>
    %108 = vector.shape_cast %107 : vector<16xf32> to vector<16x1xf32>
    %cst_47 = arith.constant 3.200000e+01 : f32
    %109 = vector.broadcast %cst_47 : f32 to vector<16x1xf32>
    %110 = arith.divf %108, %109 : vector<16x1xf32>
    %cst_48 = arith.constant 9.99999996E-13 : f32
    %111 = vector.broadcast %cst_48 : f32 to vector<16x1xf32>
    %112 = arith.addf %110, %111 : vector<16x1xf32>
    %113 = math.rsqrt %112 : vector<16x1xf32>
    %114 = vector.broadcast %113 : vector<16x1xf32> to vector<16x32xf32>
    %115 = arith.mulf %105, %114 : vector<16x32xf32>
    %116 = vector.broadcast %97 : vector<1x32xf32> to vector<16x32xf32>
    %117 = arith.mulf %115, %116 : vector<16x32xf32>
    %118 = vector.broadcast %99 : vector<1x32xf32> to vector<16x32xf32>
    %119 = arith.addf %117, %118 : vector<16x32xf32>
    %120 = arith.truncf %119 : vector<16x32xf32> to vector<16x32xbf16>
    %c0_49 = arith.constant 0 : index
    %c0_50 = arith.constant 0 : index
    %c0_51 = arith.constant 0 : index
    %121 = vector.load %arg12[%c0_49, %c0_50, %c0_51] : memref<2x32x64xbf16, #tpu.memory_space<vmem>>, vector<1x32x64xbf16>
    %122 = vector.shape_cast %121 : vector<1x32x64xbf16> to vector<32x64xbf16>
    %cst_52 = arith.constant dense<0.000000e+00> : vector<16x64xf32>
    %123 = tpu.matmul %120, %122, %cst_52 {dimension_numbers = #tpu.dot_dimension_numbers<[1], [0], [0], [1], [0, 0, 1, 1], [], []>} : vector<16x32xbf16>, vector<32x64xbf16>, vector<16x64xf32> -> vector<16x64xf32>
    %c0_53 = arith.constant 0 : index
    %c0_54 = arith.constant 0 : index
    %c0_55 = arith.constant 0 : index
    %124 = vector.load %arg13[%c0_53, %c0_54, %c0_55] : memref<2x1x64xf32, #tpu.memory_space<vmem>>, vector<1x1x64xf32>
    %125 = vector.shape_cast %124 : vector<1x1x64xf32> to vector<1x64xf32>
    %126 = vector.broadcast %125 : vector<1x64xf32> to vector<16x64xf32>
    %127 = arith.addf %123, %126 : vector<16x64xf32>
    %128 = arith.mulf %127, %127 : vector<16x64xf32>
    %129 = arith.mulf %127, %128 : vector<16x64xf32>
    %cst_56 = arith.constant 4.471500e-02 : f32
    %130 = vector.broadcast %cst_56 : f32 to vector<16x64xf32>
    %131 = arith.mulf %130, %129 : vector<16x64xf32>
    %132 = arith.addf %127, %131 : vector<16x64xf32>
    %cst_57 = arith.constant 0.797884583 : f32
    %133 = vector.broadcast %cst_57 : f32 to vector<16x64xf32>
    %134 = arith.mulf %133, %132 : vector<16x64xf32>
    %135 = math.tanh %134 : vector<16x64xf32>
    %cst_58 = arith.constant 1.000000e+00 : f32
    %136 = vector.broadcast %cst_58 : f32 to vector<16x64xf32>
    %137 = arith.addf %136, %135 : vector<16x64xf32>
    %cst_59 = arith.constant 5.000000e-01 : f32
    %138 = vector.broadcast %cst_59 : f32 to vector<16x64xf32>
    %139 = arith.mulf %138, %137 : vector<16x64xf32>
    %140 = arith.mulf %127, %139 : vector<16x64xf32>
    %141 = arith.truncf %140 : vector<16x64xf32> to vector<16x64xbf16>
    %c0_60 = arith.constant 0 : index
    %c0_61 = arith.constant 0 : index
    %c0_62 = arith.constant 0 : index
    %142 = vector.load %arg14[%c0_60, %c0_61, %c0_62] : memref<2x64x32xbf16, #tpu.memory_space<vmem>>, vector<1x64x32xbf16>
    %143 = vector.shape_cast %142 : vector<1x64x32xbf16> to vector<64x32xbf16>
    %cst_63 = arith.constant dense<0.000000e+00> : vector<16x32xf32>
    %144 = tpu.matmul %141, %143, %cst_63 {dimension_numbers = #tpu.dot_dimension_numbers<[1], [0], [0], [1], [0, 0, 1, 1], [], []>} : vector<16x64xbf16>, vector<64x32xbf16>, vector<16x32xf32> -> vector<16x32xf32>
    %c0_64 = arith.constant 0 : index
    %c0_65 = arith.constant 0 : index
    %c0_66 = arith.constant 0 : index
    %145 = vector.load %arg15[%c0_64, %c0_65, %c0_66] : memref<2x1x32xf32, #tpu.memory_space<vmem>>, vector<1x1x32xf32>
    %146 = vector.shape_cast %145 : vector<1x1x32xf32> to vector<1x32xf32>
    %147 = vector.broadcast %146 : vector<1x32xf32> to vector<16x32xf32>
    %148 = arith.addf %144, %147 : vector<16x32xf32>
    %149 = arith.addf %148, %119 : vector<16x32xf32>
    %c0_67 = arith.constant 0 : index
    %c0_68 = arith.constant 0 : index
    %c0_69 = arith.constant 0 : index
    %150 = vector.load %arg16[%c0_67, %c0_68, %c0_69] : memref<2x1x32xf32, #tpu.memory_space<vmem>>, vector<1x1x32xf32>
    %151 = vector.shape_cast %150 : vector<1x1x32xf32> to vector<1x32xf32>
    %c0_70 = arith.constant 0 : index
    %c0_71 = arith.constant 0 : index
    %c0_72 = arith.constant 0 : index
    %152 = vector.load %arg17[%c0_70, %c0_71, %c0_72] : memref<2x1x32xf32, #tpu.memory_space<vmem>>, vector<1x1x32xf32>
    %153 = vector.shape_cast %152 : vector<1x1x32xf32> to vector<1x32xf32>
    %cst_73 = arith.constant dense<0.000000e+00> : vector<16xf32>
    %154 = vector.multi_reduction <add>, %149, %cst_73 [1] : vector<16x32xf32> to vector<16xf32>
    %155 = vector.shape_cast %154 : vector<16xf32> to vector<16x1xf32>
    %cst_74 = arith.constant 3.200000e+01 : f32
    %156 = vector.broadcast %cst_74 : f32 to vector<16x1xf32>
    %157 = arith.divf %155, %156 : vector<16x1xf32>
    %158 = vector.broadcast %157 : vector<16x1xf32> to vector<16x32xf32>
    %159 = arith.subf %149, %158 : vector<16x32xf32>
    %160 = arith.mulf %159, %159 : vector<16x32xf32>
    %cst_75 = arith.constant dense<0.000000e+00> : vector<16xf32>
    %161 = vector.multi_reduction <add>, %160, %cst_75 [1] : vector<16x32xf32> to vector<16xf32>
    %162 = vector.shape_cast %161 : vector<16xf32> to vector<16x1xf32>
    %cst_76 = arith.constant 3.200000e+01 : f32
    %163 = vector.broadcast %cst_76 : f32 to vector<16x1xf32>
    %164 = arith.divf %162, %163 : vector<16x1xf32>
    %cst_77 = arith.constant 9.99999996E-13 : f32
    %165 = vector.broadcast %cst_77 : f32 to vector<16x1xf32>
    %166 = arith.addf %164, %165 : vector<16x1xf32>
    %167 = math.rsqrt %166 : vector<16x1xf32>
    %168 = vector.broadcast %167 : vector<16x1xf32> to vector<16x32xf32>
    %169 = arith.mulf %159, %168 : vector<16x32xf32>
    %170 = vector.broadcast %151 : vector<1x32xf32> to vector<16x32xf32>
    %171 = arith.mulf %169, %170 : vector<16x32xf32>
    %172 = vector.broadcast %153 : vector<1x32xf32> to vector<16x32xf32>
    %173 = arith.addf %171, %172 : vector<16x32xf32>
    %174 = arith.truncf %173 : vector<16x32xf32> to vector<16x32xbf16>
    %c1 = arith.constant 1 : index
    %c0_78 = arith.constant 0 : index
    %c0_79 = arith.constant 0 : index
    %175 = vector.load %arg6[%c1, %c0_78, %c0_79] : memref<2x32x96xbf16, #tpu.memory_space<vmem>>, vector<1x32x96xbf16>
    %176 = vector.shape_cast %175 : vector<1x32x96xbf16> to vector<32x96xbf16>
    %cst_80 = arith.constant dense<0.000000e+00> : vector<16x96xf32>
    %177 = tpu.matmul %174, %176, %cst_80 {dimension_numbers = #tpu.dot_dimension_numbers<[1], [0], [0], [1], [0, 0, 1, 1], [], []>} : vector<16x32xbf16>, vector<32x96xbf16>, vector<16x96xf32> -> vector<16x96xf32>
    %c1_81 = arith.constant 1 : index
    %c0_82 = arith.constant 0 : index
    %c0_83 = arith.constant 0 : index
    %178 = vector.load %arg7[%c1_81, %c0_82, %c0_83] : memref<2x1x96xf32, #tpu.memory_space<vmem>>, vector<1x1x96xf32>
    %179 = vector.shape_cast %178 : vector<1x1x96xf32> to vector<1x96xf32>
    %180 = vector.broadcast %179 : vector<1x96xf32> to vector<16x96xf32>
    %181 = arith.addf %177, %180 : vector<16x96xf32>
    %c1_84 = arith.constant 1 : index
    %c0_85 = arith.constant 0 : index
    %c0_86 = arith.constant 0 : index
    %182 = vector.load %arg8[%c1_84, %c0_85, %c0_86] : memref<2x32x32xbf16, #tpu.memory_space<vmem>>, vector<1x32x32xbf16>
    %183 = vector.shape_cast %182 : vector<1x32x32xbf16> to vector<32x32xbf16>
    %c1_87 = arith.constant 1 : index
    %c0_88 = arith.constant 0 : index
    %c0_89 = arith.constant 0 : index
    %184 = vector.load %arg9[%c1_87, %c0_88, %c0_89] : memref<2x1x32xf32, #tpu.memory_space<vmem>>, vector<1x1x32xf32>
    %185 = vector.shape_cast %184 : vector<1x1x32xf32> to vector<1x32xf32>
    %186 = vector.extract_strided_slice %181 {offsets = [0, 0], sizes = [16, 16], strides = [1, 1]} : vector<16x96xf32> to vector<16x16xf32>
    %187 = arith.truncf %186 : vector<16x16xf32> to vector<16x16xbf16>
    %188 = vector.extract_strided_slice %181 {offsets = [0, 32], sizes = [16, 16], strides = [1, 1]} : vector<16x96xf32> to vector<16x16xf32>
    %189 = arith.truncf %188 : vector<16x16xf32> to vector<16x16xbf16>
    %190 = vector.extract_strided_slice %181 {offsets = [0, 64], sizes = [16, 16], strides = [1, 1]} : vector<16x96xf32> to vector<16x16xf32>
    %191 = arith.truncf %190 : vector<16x16xf32> to vector<16x16xbf16>
    %cst_90 = arith.constant dense<0.000000e+00> : vector<16x16xf32>
    %192 = tpu.matmul %187, %189, %cst_90 {dimension_numbers = #tpu.dot_dimension_numbers<[1], [1], [0], [0], [0, 0, 1, 0], [], []>} : vector<16x16xbf16>, vector<16x16xbf16>, vector<16x16xf32> -> vector<16x16xf32>
    %cst_91 = arith.constant -1.000000e+09 : f32
    %193 = vector.broadcast %cst_91 : f32 to vector<16x16xf32>
    %194 = arith.select %31, %192, %193 : vector<16x16xi1>, vector<16x16xf32>
    %cst_92 = arith.constant dense<0xFF800000> : vector<16xf32>
    %195 = vector.multi_reduction <maximumf>, %194, %cst_92 [1] : vector<16x16xf32> to vector<16xf32>
    %196 = vector.shape_cast %195 : vector<16xf32> to vector<16x1xf32>
    %197 = vector.broadcast %196 : vector<16x1xf32> to vector<16x16xf32>
    %198 = arith.subf %194, %197 : vector<16x16xf32>
    %199 = math.exp %198 : vector<16x16xf32>
    %cst_93 = arith.constant dense<0.000000e+00> : vector<16xf32>
    %200 = vector.multi_reduction <add>, %199, %cst_93 [1] : vector<16x16xf32> to vector<16xf32>
    %201 = vector.shape_cast %200 : vector<16xf32> to vector<16x1xf32>
    %202 = tpu.reciprocal %201 {approx = true} : vector<16x1xf32> -> vector<16x1xf32>
    %203 = vector.broadcast %202 : vector<16x1xf32> to vector<16x16xf32>
    %204 = arith.mulf %199, %203 : vector<16x16xf32>
    %205 = arith.truncf %204 : vector<16x16xf32> to vector<16x16xbf16>
    %cst_94 = arith.constant dense<0.000000e+00> : vector<16x16xf32>
    %206 = tpu.matmul %205, %191, %cst_94 {dimension_numbers = #tpu.dot_dimension_numbers<[1], [0], [0], [1], [0, 0, 1, 1], [], []>} : vector<16x16xbf16>, vector<16x16xbf16>, vector<16x16xf32> -> vector<16x16xf32>
    %207 = arith.truncf %206 : vector<16x16xf32> to vector<16x16xbf16>
    %208 = vector.extract_strided_slice %183 {offsets = [0, 0], sizes = [16, 32], strides = [1, 1]} : vector<32x32xbf16> to vector<16x32xbf16>
    %cst_95 = arith.constant dense<0.000000e+00> : vector<16x32xf32>
    %209 = tpu.matmul %207, %208, %cst_95 {dimension_numbers = #tpu.dot_dimension_numbers<[1], [0], [0], [1], [0, 0, 1, 1], [], []>} : vector<16x16xbf16>, vector<16x32xbf16>, vector<16x32xf32> -> vector<16x32xf32>
    %210 = vector.broadcast %185 : vector<1x32xf32> to vector<16x32xf32>
    %211 = arith.addf %210, %209 : vector<16x32xf32>
    %212 = vector.extract_strided_slice %181 {offsets = [0, 16], sizes = [16, 16], strides = [1, 1]} : vector<16x96xf32> to vector<16x16xf32>
    %213 = arith.truncf %212 : vector<16x16xf32> to vector<16x16xbf16>
    %214 = vector.extract_strided_slice %181 {offsets = [0, 48], sizes = [16, 16], strides = [1, 1]} : vector<16x96xf32> to vector<16x16xf32>
    %215 = arith.truncf %214 : vector<16x16xf32> to vector<16x16xbf16>
    %216 = vector.extract_strided_slice %181 {offsets = [0, 80], sizes = [16, 16], strides = [1, 1]} : vector<16x96xf32> to vector<16x16xf32>
    %217 = arith.truncf %216 : vector<16x16xf32> to vector<16x16xbf16>
    %cst_96 = arith.constant dense<0.000000e+00> : vector<16x16xf32>
    %218 = tpu.matmul %213, %215, %cst_96 {dimension_numbers = #tpu.dot_dimension_numbers<[1], [1], [0], [0], [0, 0, 1, 0], [], []>} : vector<16x16xbf16>, vector<16x16xbf16>, vector<16x16xf32> -> vector<16x16xf32>
    %cst_97 = arith.constant -1.000000e+09 : f32
    %219 = vector.broadcast %cst_97 : f32 to vector<16x16xf32>
    %220 = arith.select %31, %218, %219 : vector<16x16xi1>, vector<16x16xf32>
    %cst_98 = arith.constant dense<0xFF800000> : vector<16xf32>
    %221 = vector.multi_reduction <maximumf>, %220, %cst_98 [1] : vector<16x16xf32> to vector<16xf32>
    %222 = vector.shape_cast %221 : vector<16xf32> to vector<16x1xf32>
    %223 = vector.broadcast %222 : vector<16x1xf32> to vector<16x16xf32>
    %224 = arith.subf %220, %223 : vector<16x16xf32>
    %225 = math.exp %224 : vector<16x16xf32>
    %cst_99 = arith.constant dense<0.000000e+00> : vector<16xf32>
    %226 = vector.multi_reduction <add>, %225, %cst_99 [1] : vector<16x16xf32> to vector<16xf32>
    %227 = vector.shape_cast %226 : vector<16xf32> to vector<16x1xf32>
    %228 = tpu.reciprocal %227 {approx = true} : vector<16x1xf32> -> vector<16x1xf32>
    %229 = vector.broadcast %228 : vector<16x1xf32> to vector<16x16xf32>
    %230 = arith.mulf %225, %229 : vector<16x16xf32>
    %231 = arith.truncf %230 : vector<16x16xf32> to vector<16x16xbf16>
    %cst_100 = arith.constant dense<0.000000e+00> : vector<16x16xf32>
    %232 = tpu.matmul %231, %217, %cst_100 {dimension_numbers = #tpu.dot_dimension_numbers<[1], [0], [0], [1], [0, 0, 1, 1], [], []>} : vector<16x16xbf16>, vector<16x16xbf16>, vector<16x16xf32> -> vector<16x16xf32>
    %233 = arith.truncf %232 : vector<16x16xf32> to vector<16x16xbf16>
    %234 = vector.extract_strided_slice %183 {offsets = [16, 0], sizes = [16, 32], strides = [1, 1]} : vector<32x32xbf16> to vector<16x32xbf16>
    %cst_101 = arith.constant dense<0.000000e+00> : vector<16x32xf32>
    %235 = tpu.matmul %233, %234, %cst_101 {dimension_numbers = #tpu.dot_dimension_numbers<[1], [0], [0], [1], [0, 0, 1, 1], [], []>} : vector<16x16xbf16>, vector<16x32xbf16>, vector<16x32xf32> -> vector<16x32xf32>
    %236 = arith.addf %211, %235 : vector<16x32xf32>
    %237 = arith.addf %236, %173 : vector<16x32xf32>
    %c1_102 = arith.constant 1 : index
    %c0_103 = arith.constant 0 : index
    %c0_104 = arith.constant 0 : index
    %238 = vector.load %arg10[%c1_102, %c0_103, %c0_104] : memref<2x1x32xf32, #tpu.memory_space<vmem>>, vector<1x1x32xf32>
    %239 = vector.shape_cast %238 : vector<1x1x32xf32> to vector<1x32xf32>
    %c1_105 = arith.constant 1 : index
    %c0_106 = arith.constant 0 : index
    %c0_107 = arith.constant 0 : index
    %240 = vector.load %arg11[%c1_105, %c0_106, %c0_107] : memref<2x1x32xf32, #tpu.memory_space<vmem>>, vector<1x1x32xf32>
    %241 = vector.shape_cast %240 : vector<1x1x32xf32> to vector<1x32xf32>
    %cst_108 = arith.constant dense<0.000000e+00> : vector<16xf32>
    %242 = vector.multi_reduction <add>, %237, %cst_108 [1] : vector<16x32xf32> to vector<16xf32>
    %243 = vector.shape_cast %242 : vector<16xf32> to vector<16x1xf32>
    %cst_109 = arith.constant 3.200000e+01 : f32
    %244 = vector.broadcast %cst_109 : f32 to vector<16x1xf32>
    %245 = arith.divf %243, %244 : vector<16x1xf32>
    %246 = vector.broadcast %245 : vector<16x1xf32> to vector<16x32xf32>
    %247 = arith.subf %237, %246 : vector<16x32xf32>
    %248 = arith.mulf %247, %247 : vector<16x32xf32>
    %cst_110 = arith.constant dense<0.000000e+00> : vector<16xf32>
    %249 = vector.multi_reduction <add>, %248, %cst_110 [1] : vector<16x32xf32> to vector<16xf32>
    %250 = vector.shape_cast %249 : vector<16xf32> to vector<16x1xf32>
    %cst_111 = arith.constant 3.200000e+01 : f32
    %251 = vector.broadcast %cst_111 : f32 to vector<16x1xf32>
    %252 = arith.divf %250, %251 : vector<16x1xf32>
    %cst_112 = arith.constant 9.99999996E-13 : f32
    %253 = vector.broadcast %cst_112 : f32 to vector<16x1xf32>
    %254 = arith.addf %252, %253 : vector<16x1xf32>
    %255 = math.rsqrt %254 : vector<16x1xf32>
    %256 = vector.broadcast %255 : vector<16x1xf32> to vector<16x32xf32>
    %257 = arith.mulf %247, %256 : vector<16x32xf32>
    %258 = vector.broadcast %239 : vector<1x32xf32> to vector<16x32xf32>
    %259 = arith.mulf %257, %258 : vector<16x32xf32>
    %260 = vector.broadcast %241 : vector<1x32xf32> to vector<16x32xf32>
    %261 = arith.addf %259, %260 : vector<16x32xf32>
    %262 = arith.truncf %261 : vector<16x32xf32> to vector<16x32xbf16>
    %c1_113 = arith.constant 1 : index
    %c0_114 = arith.constant 0 : index
    %c0_115 = arith.constant 0 : index
    %263 = vector.load %arg12[%c1_113, %c0_114, %c0_115] : memref<2x32x64xbf16, #tpu.memory_space<vmem>>, vector<1x32x64xbf16>
    %264 = vector.shape_cast %263 : vector<1x32x64xbf16> to vector<32x64xbf16>
    %cst_116 = arith.constant dense<0.000000e+00> : vector<16x64xf32>
    %265 = tpu.matmul %262, %264, %cst_116 {dimension_numbers = #tpu.dot_dimension_numbers<[1], [0], [0], [1], [0, 0, 1, 1], [], []>} : vector<16x32xbf16>, vector<32x64xbf16>, vector<16x64xf32> -> vector<16x64xf32>
    %c1_117 = arith.constant 1 : index
    %c0_118 = arith.constant 0 : index
    %c0_119 = arith.constant 0 : index
    %266 = vector.load %arg13[%c1_117, %c0_118, %c0_119] : memref<2x1x64xf32, #tpu.memory_space<vmem>>, vector<1x1x64xf32>
    %267 = vector.shape_cast %266 : vector<1x1x64xf32> to vector<1x64xf32>
    %268 = vector.broadcast %267 : vector<1x64xf32> to vector<16x64xf32>
    %269 = arith.addf %265, %268 : vector<16x64xf32>
    %270 = arith.mulf %269, %269 : vector<16x64xf32>
    %271 = arith.mulf %269, %270 : vector<16x64xf32>
    %cst_120 = arith.constant 4.471500e-02 : f32
    %272 = vector.broadcast %cst_120 : f32 to vector<16x64xf32>
    %273 = arith.mulf %272, %271 : vector<16x64xf32>
    %274 = arith.addf %269, %273 : vector<16x64xf32>
    %cst_121 = arith.constant 0.797884583 : f32
    %275 = vector.broadcast %cst_121 : f32 to vector<16x64xf32>
    %276 = arith.mulf %275, %274 : vector<16x64xf32>
    %277 = math.tanh %276 : vector<16x64xf32>
    %cst_122 = arith.constant 1.000000e+00 : f32
    %278 = vector.broadcast %cst_122 : f32 to vector<16x64xf32>
    %279 = arith.addf %278, %277 : vector<16x64xf32>
    %cst_123 = arith.constant 5.000000e-01 : f32
    %280 = vector.broadcast %cst_123 : f32 to vector<16x64xf32>
    %281 = arith.mulf %280, %279 : vector<16x64xf32>
    %282 = arith.mulf %269, %281 : vector<16x64xf32>
    %283 = arith.truncf %282 : vector<16x64xf32> to vector<16x64xbf16>
    %c1_124 = arith.constant 1 : index
    %c0_125 = arith.constant 0 : index
    %c0_126 = arith.constant 0 : index
    %284 = vector.load %arg14[%c1_124, %c0_125, %c0_126] : memref<2x64x32xbf16, #tpu.memory_space<vmem>>, vector<1x64x32xbf16>
    %285 = vector.shape_cast %284 : vector<1x64x32xbf16> to vector<64x32xbf16>
    %cst_127 = arith.constant dense<0.000000e+00> : vector<16x32xf32>
    %286 = tpu.matmul %283, %285, %cst_127 {dimension_numbers = #tpu.dot_dimension_numbers<[1], [0], [0], [1], [0, 0, 1, 1], [], []>} : vector<16x64xbf16>, vector<64x32xbf16>, vector<16x32xf32> -> vector<16x32xf32>
    %c1_128 = arith.constant 1 : index
    %c0_129 = arith.constant 0 : index
    %c0_130 = arith.constant 0 : index
    %287 = vector.load %arg15[%c1_128, %c0_129, %c0_130] : memref<2x1x32xf32, #tpu.memory_space<vmem>>, vector<1x1x32xf32>
    %288 = vector.shape_cast %287 : vector<1x1x32xf32> to vector<1x32xf32>
    %289 = vector.broadcast %288 : vector<1x32xf32> to vector<16x32xf32>
    %290 = arith.addf %286, %289 : vector<16x32xf32>
    %291 = arith.addf %290, %261 : vector<16x32xf32>
    %c1_131 = arith.constant 1 : index
    %c0_132 = arith.constant 0 : index
    %c0_133 = arith.constant 0 : index
    %292 = vector.load %arg16[%c1_131, %c0_132, %c0_133] : memref<2x1x32xf32, #tpu.memory_space<vmem>>, vector<1x1x32xf32>
    %293 = vector.shape_cast %292 : vector<1x1x32xf32> to vector<1x32xf32>
    %c1_134 = arith.constant 1 : index
    %c0_135 = arith.constant 0 : index
    %c0_136 = arith.constant 0 : index
    %294 = vector.load %arg17[%c1_134, %c0_135, %c0_136] : memref<2x1x32xf32, #tpu.memory_space<vmem>>, vector<1x1x32xf32>
    %295 = vector.shape_cast %294 : vector<1x1x32xf32> to vector<1x32xf32>
    %cst_137 = arith.constant dense<0.000000e+00> : vector<16xf32>
    %296 = vector.multi_reduction <add>, %291, %cst_137 [1] : vector<16x32xf32> to vector<16xf32>
    %297 = vector.shape_cast %296 : vector<16xf32> to vector<16x1xf32>
    %cst_138 = arith.constant 3.200000e+01 : f32
    %298 = vector.broadcast %cst_138 : f32 to vector<16x1xf32>
    %299 = arith.divf %297, %298 : vector<16x1xf32>
    %300 = vector.broadcast %299 : vector<16x1xf32> to vector<16x32xf32>
    %301 = arith.subf %291, %300 : vector<16x32xf32>
    %302 = arith.mulf %301, %301 : vector<16x32xf32>
    %cst_139 = arith.constant dense<0.000000e+00> : vector<16xf32>
    %303 = vector.multi_reduction <add>, %302, %cst_139 [1] : vector<16x32xf32> to vector<16xf32>
    %304 = vector.shape_cast %303 : vector<16xf32> to vector<16x1xf32>
    %cst_140 = arith.constant 3.200000e+01 : f32
    %305 = vector.broadcast %cst_140 : f32 to vector<16x1xf32>
    %306 = arith.divf %304, %305 : vector<16x1xf32>
    %cst_141 = arith.constant 9.99999996E-13 : f32
    %307 = vector.broadcast %cst_141 : f32 to vector<16x1xf32>
    %308 = arith.addf %306, %307 : vector<16x1xf32>
    %309 = math.rsqrt %308 : vector<16x1xf32>
    %310 = vector.broadcast %309 : vector<16x1xf32> to vector<16x32xf32>
    %311 = arith.mulf %301, %310 : vector<16x32xf32>
    %312 = vector.broadcast %293 : vector<1x32xf32> to vector<16x32xf32>
    %313 = arith.mulf %311, %312 : vector<16x32xf32>
    %314 = vector.broadcast %295 : vector<1x32xf32> to vector<16x32xf32>
    %315 = arith.addf %313, %314 : vector<16x32xf32>
    %316 = arith.truncf %315 : vector<16x32xf32> to vector<16x32xbf16>
    %c0_142 = arith.constant 0 : index
    %c0_143 = arith.constant 0 : index
    %317 = vector.load %arg18[%c0_142, %c0_143] : memref<32x32xbf16, #tpu.memory_space<vmem>>, vector<32x32xbf16>
    %cst_144 = arith.constant dense<0.000000e+00> : vector<16x32xf32>
    %318 = tpu.matmul %316, %317, %cst_144 {dimension_numbers = #tpu.dot_dimension_numbers<[1], [0], [0], [1], [0, 0, 1, 1], [], []>} : vector<16x32xbf16>, vector<32x32xbf16>, vector<16x32xf32> -> vector<16x32xf32>
    %c0_145 = arith.constant 0 : index
    %c0_146 = arith.constant 0 : index
    %319 = vector.load %arg19[%c0_145, %c0_146] : memref<1x32xf32, #tpu.memory_space<vmem>>, vector<1x32xf32>
    %320 = vector.broadcast %319 : vector<1x32xf32> to vector<16x32xf32>
    %321 = arith.addf %318, %320 : vector<16x32xf32>
    %cst_147 = arith.constant 0.000000e+00 : f32
    %322 = vector.broadcast %cst_147 : f32 to vector<16x32xf32>
    %323 = arith.maximumf %321, %322 : vector<16x32xf32>
    %c0_148 = arith.constant 0 : index
    %c0_149 = arith.constant 0 : index
    %324 = vector.load %arg20[%c0_148, %c0_149] : memref<1x32xbf16, #tpu.memory_space<vmem>>, vector<1x32xbf16>
    %325 = arith.truncf %323 : vector<16x32xf32> to vector<16x32xbf16>
    %cst_150 = arith.constant dense<0.000000e+00> : vector<1x16xf32>
    %326 = tpu.matmul %324, %325, %cst_150 {dimension_numbers = #tpu.dot_dimension_numbers<[1], [1], [0], [0], [0, 0, 1, 0], [], []>} : vector<1x32xbf16>, vector<16x32xbf16>, vector<1x16xf32> -> vector<1x16xf32>
    %c0_151 = arith.constant 0 : index
    %327 = memref.load %arg21[%c0_151] : memref<1xf32, #tpu.memory_space<smem>>
    %328 = vector.broadcast %327 : f32 to vector<1x16xf32>
    %329 = arith.addf %326, %328 : vector<1x16xf32>
    %c0_152 = arith.constant 0 : index
    %c0_153 = arith.constant 0 : index
    %330 = vector.load %arg22[%c0_152, %c0_153] : memref<1x16xf32, #tpu.memory_space<vmem>>, vector<1x16xf32>
    tpu.vector_store %arg22[%c0_152, %c0_153], %329 {strides = array<i32>} : memref<1x16xf32, #tpu.memory_space<vmem>>, vector<1x16xf32>,
    return
  }
  func.func @transform_0(%arg0: i32) -> (i32, i32) {
    %c0_i32 = arith.constant 0 : i32
    %c0_i32_0 = arith.constant 0 : i32
    %c0_i32_1 = arith.constant 0 : i32
    return %c0_i32, %c0_i32_0 : i32, i32
  }
  func.func @transform_1(%arg0: i32) -> (i32, i32) {
    %c0_i32 = arith.constant 0 : i32
    %c0_i32_0 = arith.constant 0 : i32
    %c0_i32_1 = arith.constant 0 : i32
    return %c0_i32, %c0_i32_0 : i32, i32
  }
  func.func @transform_2(%arg0: i32) -> (i32, i32) {
    %c0_i32 = arith.constant 0 : i32
    %c0_i32_0 = arith.constant 0 : i32
    %c0_i32_1 = arith.constant 0 : i32
    return %c0_i32, %c0_i32_0 : i32, i32
  }
  func.func @transform_3(%arg0: i32) -> (i32, i32) {
    %c0_i32 = arith.constant 0 : i32
    %c0_i32_0 = arith.constant 0 : i32
    %c0_i32_1 = arith.constant 0 : i32
    return %c0_i32, %c0_i32_0 : i32, i32
  }
  func.func @transform_4(%arg0: i32) -> (i32, i32) {
    %c0_i32 = arith.constant 0 : i32
    %c0_i32_0 = arith.constant 0 : i32
    %c0_i32_1 = arith.constant 0 : i32
    return %c0_i32, %c0_i32_0 : i32, i32
  }
  func.func @transform_5(%arg0: i32) -> (i32, i32, i32) {
    %c0_i32 = arith.constant 0 : i32
    %c0_i32_0 = arith.constant 0 : i32
    %c0_i32_1 = arith.constant 0 : i32
    %c0_i32_2 = arith.constant 0 : i32
    return %c0_i32, %c0_i32_0, %c0_i32_1 : i32, i32, i32
  }
  func.func @transform_6(%arg0: i32) -> (i32, i32, i32) {
    %c0_i32 = arith.constant 0 : i32
    %c0_i32_0 = arith.constant 0 : i32
    %c0_i32_1 = arith.constant 0 : i32
    %c0_i32_2 = arith.constant 0 : i32
    return %c0_i32, %c0_i32_0, %c0_i32_1 : i32, i32, i32
  }
  func.func @transform_7(%arg0: i32) -> (i32, i32, i32) {
    %c0_i32 = arith.constant 0 : i32
    %c0_i32_0 = arith.constant 0 : i32
    %c0_i32_1 = arith.constant 0 : i32
    %c0_i32_2 = arith.constant 0 : i32
    return %c0_i32, %c0_i32_0, %c0_i32_1 : i32, i32, i32
  }
  func.func @transform_8(%arg0: i32) -> (i32, i32, i32) {
    %c0_i32 = arith.constant 0 : i32
    %c0_i32_0 = arith.constant 0 : i32
    %c0_i32_1 = arith.constant 0 : i32
    %c0_i32_2 = arith.constant 0 : i32
    return %c0_i32, %c0_i32_0, %c0_i32_1 : i32, i32, i32
  }
  func.func @transform_9(%arg0: i32) -> (i32, i32, i32) {
    %c0_i32 = arith.constant 0 : i32
    %c0_i32_0 = arith.constant 0 : i32
    %c0_i32_1 = arith.constant 0 : i32
    %c0_i32_2 = arith.constant 0 : i32
    return %c0_i32, %c0_i32_0, %c0_i32_1 : i32, i32, i32
  }
  func.func @transform_10(%arg0: i32) -> (i32, i32, i32) {
    %c0_i32 = arith.constant 0 : i32
    %c0_i32_0 = arith.constant 0 : i32
    %c0_i32_1 = arith.constant 0 : i32
    %c0_i32_2 = arith.constant 0 : i32
    return %c0_i32, %c0_i32_0, %c0_i32_1 : i32, i32, i32
  }
  func.func @transform_11(%arg0: i32) -> (i32, i32, i32) {
    %c0_i32 = arith.constant 0 : i32
    %c0_i32_0 = arith.constant 0 : i32
    %c0_i32_1 = arith.constant 0 : i32
    %c0_i32_2 = arith.constant 0 : i32
    return %c0_i32, %c0_i32_0, %c0_i32_1 : i32, i32, i32
  }
  func.func @transform_12(%arg0: i32) -> (i32, i32, i32) {
    %c0_i32 = arith.constant 0 : i32
    %c0_i32_0 = arith.constant 0 : i32
    %c0_i32_1 = arith.constant 0 : i32
    %c0_i32_2 = arith.constant 0 : i32
    return %c0_i32, %c0_i32_0, %c0_i32_1 : i32, i32, i32
  }
  func.func @transform_13(%arg0: i32) -> (i32, i32, i32) {
    %c0_i32 = arith.constant 0 : i32
    %c0_i32_0 = arith.constant 0 : i32
    %c0_i32_1 = arith.constant 0 : i32
    %c0_i32_2 = arith.constant 0 : i32
    return %c0_i32, %c0_i32_0, %c0_i32_1 : i32, i32, i32
  }
  func.func @transform_14(%arg0: i32) -> (i32, i32, i32) {
    %c0_i32 = arith.constant 0 : i32
    %c0_i32_0 = arith.constant 0 : i32
    %c0_i32_1 = arith.constant 0 : i32
    %c0_i32_2 = arith.constant 0 : i32
    return %c0_i32, %c0_i32_0, %c0_i32_1 : i32, i32, i32
  }
  func.func @transform_15(%arg0: i32) -> (i32, i32, i32) {
    %c0_i32 = arith.constant 0 : i32
    %c0_i32_0 = arith.constant 0 : i32
    %c0_i32_1 = arith.constant 0 : i32
    %c0_i32_2 = arith.constant 0 : i32
    return %c0_i32, %c0_i32_0, %c0_i32_1 : i32, i32, i32
  }
  func.func @transform_16(%arg0: i32) -> (i32, i32, i32) {
    %c0_i32 = arith.constant 0 : i32
    %c0_i32_0 = arith.constant 0 : i32
    %c0_i32_1 = arith.constant 0 : i32
    %c0_i32_2 = arith.constant 0 : i32
    return %c0_i32, %c0_i32_0, %c0_i32_1 : i32, i32, i32
  }
  func.func @transform_17(%arg0: i32) -> (i32, i32) {
    %c0_i32 = arith.constant 0 : i32
    %c0_i32_0 = arith.constant 0 : i32
    %c0_i32_1 = arith.constant 0 : i32
    return %c0_i32, %c0_i32_0 : i32, i32
  }
  func.func @transform_18(%arg0: i32) -> (i32, i32) {
    %c0_i32 = arith.constant 0 : i32
    %c0_i32_0 = arith.constant 0 : i32
    %c0_i32_1 = arith.constant 0 : i32
    return %c0_i32, %c0_i32_0 : i32, i32
  }
  func.func @transform_19(%arg0: i32) -> (i32, i32) {
    %c0_i32 = arith.constant 0 : i32
    %c0_i32_0 = arith.constant 0 : i32
    %c0_i32_1 = arith.constant 0 : i32
    return %c0_i32, %c0_i32_0 : i32, i32
  }
  func.func @transform_20(%arg0: i32) -> i32 {
    %c0_i32 = arith.constant 0 : i32
    %c0_i32_0 = arith.constant 0 : i32
    return %c0_i32 : i32
  }
  func.func @transform_21(%arg0: i32) -> (i32, i32) {
    %c0_i32 = arith.constant 0 : i32
    %c0_i32_0 = arith.constant 0 : i32
    %c0_i32_1 = arith.constant 0 : i32
    return %c0_i32, %c0_i32_0 : i32, i32
  }
}

</mosaic_0001>

<bundles_post_ra>
// kernel: electra_discriminator_forward.1
= control target key start
LH: loop header
LB: loop body
LE: loop exit
PB: predicated region body
PF: predicated region fallthrough
CT: control target
= control target key end

     0   :  { %vm74_vm0 = vcmask 261120   ;;  %v2043_v14 = vmov 0.0   ;;  %vm2044_vm1 = vmmov 0   ;;  %v2045_v40 = vmov 0   ;;  %s2049_s24 = smov 80   ;;  %s2506_s0 = inlined_call_operand.vmem [shape: f32[16,32], index: 0, kind: input, shape index: {}]   ;;  %s2507_s5 = inlined_call_operand.vmem [shape: bf16[2,32,96], index: 5, kind: input, shape index: {}]   ;;  %s2508_s3 = inlined_call_operand.vmem [shape: f32[1,32], index: 3, kind: input, shape index: {}]   ;;  %s2509_s4 = inlined_call_operand.vmem [shape: f32[1,32], index: 4, kind: input, shape index: {}]   ;;  %s2510_s6 = inlined_call_operand.vmem [shape: f32[2,1,96], index: 6, kind: input, shape index: {}]   ;;  %s2511_s1 = inlined_call_operand.vmem [shape: s32[16,1], index: 1, kind: input, shape index: {}]   ;;  %s2512_s2 = inlined_call_operand.vmem [shape: s32[1,16], index: 2, kind: input, shape index: {}]   ;;  %s2513_s7 = inlined_call_operand.vmem [shape: bf16[2,32,32], index: 7, kind: input, shape index: {}]   ;;  %s2514_s8 = inlined_call_operand.vmem [shape: f32[2,1,32], index: 8, kind: input, shape index: {}]   ;;  %s2515_s11 = inlined_call_operand.vmem [shape: bf16[2,32,64], index: 11, kind: input, shape index: {}]   ;;  %s2516_s9 = inlined_call_operand.vmem [shape: f32[2,1,32], index: 9, kind: input, shape index: {}]   ;;  %s2517_s10 = inlined_call_operand.vmem [shape: f32[2,1,32], index: 10, kind: input, shape index: {}]   ;;  %s2518_s13 = inlined_call_operand.vmem [shape: bf16[2,64,32], index: 13, kind: input, shape index: {}]   ;;  %s2519_s12 = inlined_call_operand.vmem [shape: f32[2,1,64], index: 12, kind: input, shape index: {}]   ;;  %s2520_s14 = inlined_call_operand.vmem [shape: f32[2,1,32], index: 14, kind: input, shape index: {}]   ;;  %s2521_s15 = inlined_call_operand.vmem [shape: f32[2,1,32], index: 15, kind: input, shape index: {}]   ;;  %s2522_s16 = inlined_call_operand.vmem [shape: f32[2,1,32], index: 16, kind: input, shape index: {}]   ;;  %s2523_s17 = inlined_call_operand.vmem [shape: bf16[32,32], index: 17, kind: input, shape index: {}]   ;;  %s2524_s18 = inlined_call_operand.vmem [shape: f32[1,32], index: 18, kind: input, shape index: {}]   ;;  %s2525_s19 = inlined_call_operand.vmem [shape: bf16[1,32], index: 19, kind: input, shape index: {}]   ;;  %s2526_s20 = inlined_call_operand.<no memory space> [shape: f32[1], index: 20, kind: input, shape index: {}]   ;;  %s2527_s21 = inlined_call_operand.vmem [shape: f32[1,16], index: 21, kind: output, shape index: {}]  }
   0x1   :  { %2532 = sst [smem:[#allocation3_spill]] %s2506_s0  ;;  %1809 = vmatprep.subr.bf16.mxu0 %v2043_v14  ;;  %1813 = vmatprep.mubr.msk.bf16.mxu0 %vm2044_vm1, %v2043_v14  ;;  %vm219_vm2 = vcmask 130048   ;;  %v118_v47 = vlaneseq  ;;  %v1670_v49 = vld [vmem:[%s2512_s2] ss:$0 sm:$0xff]  ;;  %s2047_s2 = smov 64   ;;  %vm746_vm9 = vcmask 523264  }
   0x2   :  { %2533 = sst [smem:[#allocation4_spill]] %s2507_s5  ;;  %1817 = vmatprep.subr.bf16.mxu1 %v2043_v14  ;;  %1819 = vmatprep.mubr.msk.bf16.mxu1 %vm2044_vm1, %v2043_v14  ;;  %s2048_s5 = smov 112   ;;  %vm1662_vm10 = vcmask 122880  }
   0x3   :  { %2534 = sst [smem:[#allocation5_spill]] %s2508_s3  ;;  %1959 = vset.pattern.permute.xlu1 %v2045_v40  ;;  %1960 = vset.pattern.permute.xlu0 %v2045_v40  ;;  %v122_v48 = vand.u32 127, %v118_v47  ;;  %v119_v51 = vshrl.u32 %v118_v47, 7 }
   0x4   :  { %2535 = sst [smem:[#allocation6_spill]] %s2509_s4 }
   0x5   :  { %2536 = sst [smem:[#allocation7_spill]] %s2510_s6  ;;  %vm138_vm3 = vcmp.le.s32.totalorder %v122_v48, %v119_v51  ;;  %v120_v52 = vadd.s32 8, %v119_v51 }
   0x6   :  { %2537 = sst [smem:[#allocation8_spill]] %s2511_s1  ;;  %s2046_s1 = smov 96  }
   0x7   :  { %s2538_s26 = sld [smem:[#allocation3_spill]]  ;;  %vm139_vm6 = vcmp.le.s32.totalorder %v122_v48, %v120_v52 }
   0x8   :  { %s2539_s0 = sld [smem:[#allocation4_spill]] }
   0x9   :  { %s2540_s23 = sld [smem:[#allocation5_spill]] }
   0xa   :  { %s2541_s3 = sld [smem:[#allocation6_spill]] }
   0xb   :  { %s2542_s27 = sld [smem:[#allocation7_spill]] }
   0xc   :  { %s2543_s29 = sld [smem:[#allocation8_spill]] }
   0xd   :  { %v70_v0 = vld [vmem:[%s2538_s26] sm:$0xff]  ;;  %v71_v1 = vld [vmem:[%s2538_s26 + $0x8] sm:$0xff]  ;;  %s2050_s26 = smov 48  }
   0xe   :  { %v75_v2 = vsel %vm74_vm0, %v70_v0, 0.0  ;;  %v78_v3 = vsel %vm74_vm0, %v71_v1, 0.0  ;;  %v1961_v15 = vld [vmem:[%s2539_s0 + $0x8] sm:$0xff]   ;;  %v1962_v16 = vld [vmem:[%s2539_s0] sm:$0xff]  }
   0xf   :  { %76 = vadd.xlane.f32.xlu0 %v75_v2  ;;  %1810 = vmatpush3.bf16.msra.mxu0 %v1961_v15  ;;  %v1668_v25 = vld [vmem:[%s2540_s23] ss:$0 sm:$0xff] }
  0x10   :  { %1811 = vmatprep.subr.bf16.mxu0 %v2043_v14  ;;  %v1669_v29 = vld [vmem:[%s2541_s3] ss:$0 sm:$0xff] }
  0x11   :  { %v1671_v35 = vld [vmem:[%s2542_s27] ss:$0 sm:$0xff] }
  0x12   :  { %v123_v41 = vld [vmem:[%s2543_s29] sm:$0xff]  ;;  %v124_v44 = vld [vmem:[%s2543_s29 + $0x8] sm:$0xff] }
  0x13   :  { %79 = vadd.xlane.f32.xlu0 %v78_v3  ;;  %1812 = vmatpush3.bf16.msra.mxu0 %v1962_v16 }
  0x14   :  { %1823 = vmatprep.subr.bf16.mxu0 %v2043_v14 }
  0x98   :  { %v77_v4 = vpop.xlane.xlu0 %76 }
  0x99   :  { %v82_v5 = vmul.f32 0.03125, %v77_v4 }
  0x9b   :  { %v84_v6 = vsub.f32 %v70_v0, %v82_v5 }
  0x9c   :  { %v80_v7 = vpop.xlane.xlu0 %79 }
  0x9d   :  { %v83_v8 = vmul.f32 0.03125, %v80_v7  ;;  %v86_v9 = vmul.f32 %v84_v6, %v84_v6 }
  0x9f   :  { %v85_v10 = vsub.f32 %v71_v1, %v83_v8  ;;  %v88_v11 = vsel %vm74_vm0, %v86_v9, 0.0 }
  0xa0   :  { %89 = vadd.xlane.f32.xlu1 %v88_v11 }
  0xa1   :  { %v87_v12 = vmul.f32 %v85_v10, %v85_v10 }
  0xa3   :  { %v91_v13 = vsel %vm74_vm0, %v87_v12, 0.0 }
  0xa4   :  { %92 = vadd.xlane.f32.xlu1 %v91_v13 }
  0xb5   :  { %127 = vperm.xlu1 %1959, %v123_v41  }
  0xb9   :  { %130 = vperm.xlu1 %1959, %v124_v44  }
 0x129   :  { %v90_v17 = vpop.xlane.xlu1 %89 }
 0x12a   :  { %v94_v18 = vmul.f32 0.03125, %v90_v17 }
 0x12c   :  { %v96_v19 = vadd.f32 1e-12, %v94_v18 }
 0x12d   :  { %v93_v20 = vpop.xlane.xlu1 %92 }
 0x12e   :  { %1983 = vrsqrt.f32 %v96_v19  ;;  %v95_v21 = vmul.f32 0.03125, %v93_v20 }
 0x130   :  { %v97_v22 = vadd.f32 1e-12, %v95_v21 }
 0x131   :  { %v128_v50 = vpop.permute.xlu1 %127 }
 0x132   :  { %1985 = vrsqrt.f32 %v97_v22  ;;  %vm136_vm4 = vcmp.eq.s32.totalorder %v128_v50, %v1670_v49  ;;  %v1963_v22 = vld [vmem:[%s2513_s7] sm:$0xff]  }
 0x133   :  { %vm2222_vm5 = vmand %vm136_vm4, %vm138_vm3 }
 0x135   :  { %v131_v54 = vpop.permute.xlu1 %130 }
 0x136   :  { %vm137_vm7 = vcmp.eq.s32.totalorder %v131_v54, %v1670_v49 }
 0x137   :  { %vm2229_vm8 = vmand %vm137_vm7, %vm139_vm6 }
 0x13b   :  { %v1984_v23 = vpop.eup %1983 }
 0x13c   :  { %v100_v24 = vmul.f32 %v1984_v23, %v84_v6 }
 0x13e   :  { %v108_v28 = vmul.f32 %v1668_v25, %v100_v24 }
 0x13f   :  { %v1986_v26 = vpop.eup %1985 }
 0x140   :  { %v101_v27 = vmul.f32 %v1986_v26, %v85_v10  ;;  %v2191_v31 = vadd.f32 %v1669_v29, %v108_v28 }
 0x142   :  { %v109_v30 = vmul.f32 %v1668_v25, %v101_v27 }
 0x144   :  { %v2193_v32 = vadd.f32 %v1669_v29, %v109_v30 }
 0x146   :  { %v142_v33 = vpack.c.bf16 %v2193_v32, %v2191_v31 }
 0x148   :  { %1814 = vmatmul.mubr.msk.bf16.vlgmr.msra.gmra.mxu0 %vm74_vm0, %v142_v33 }
 0x149   :  { %1825 = vmatprep.mubr.msk.bf16.mxu0 %vm2044_vm1, %v2043_v14 }
 0x208   :  { %v203_v34 = vpop.f32.mrf.mxu0 }
 0x209   :  { %v204_v38 = vadd.f32 %v1671_v35, %v203_v34 }
 0x20a   :  { %v1815_v36 = vpop.f32.mrf.mxu0 }
 0x20c   :  { %v206_v37 = vpop.f32.mrf.mxu0 }
 0x20d   :  { %v207_v39 = vadd.f32 %v1671_v35, %v206_v37 }
 0x20e   :  { %v1816_v42 = vpop.f32.mrf.mxu0 }
 0x20f   :  { %v2206_v43 = vpack.c.bf16 %v207_v39, %v204_v38 }
 0x211   :  { %217 = vrot.lane.b32.xlu0 %v2206_v43, %s2046_s1 }
 0x283   :  { %v218_v45 = vpop.permute.xlu0 %217 }
 0x284   :  { %v224_v46 = vsel %vm219_vm2, %v218_v45, 0 }
 0x285   :  { %1818 = vmatpush3.bf16.xpose.msra.mxu1 %v224_v46 }
 0x286   :  { %1829 = vmatprep.subr.bf16.mxu1 %v2043_v14 }
 0x28c   :  { %1820 = vmatmul.mubr.msk.bf16.vlgmr.msra.gmra.mxu1 %vm219_vm2, %v2206_v43 }
 0x28d   :  { %1831 = vmatprep.mubr.msk.bf16.mxu1 %vm2044_vm1, %v2043_v14  ;;  %1830 = vmatpush3.bf16.msra.mxu1 %v1963_v22 }
 0x28e   :  { %1841 = vmatprep.subr.bf16.mxu1 %v2043_v14 }
 0x34c   :  { %v260_v55 = vpop.f32.mrf.mxu1 }
 0x34d   :  { %v267_v56 = vsel %vm2222_vm5, %v260_v55, -1e+09 }
 0x34e   :  { %v1821_v57 = vpop.f32.mrf.mxu1  ;;  %v269_v58 = vsel %vm219_vm2, %v267_v56, -inf }
 0x34f   :  { %270 = vmax.xlane.f32.xlu1 %v269_v58 }
 0x350   :  { %v263_v60 = vpop.f32.mrf.mxu1 }
 0x351   :  { %v268_v61 = vsel %vm2229_vm8, %v263_v60, -1e+09 }
 0x352   :  { %v1822_v62 = vpop.f32.mrf.mxu1  ;;  %v272_v63 = vsel %vm219_vm2, %v268_v61, -inf }
 0x353   :  { %273 = vmax.xlane.f32.xlu0 %v272_v63 }
 0x360   :  { %292 = vrot.lane.b32.xlu1 %v2206_v43, %s2047_s2 }
 0x364   :  { %398 = vrot.lane.b32.xlu1 %v2206_v43, %s2048_s5 }
 0x3d8   :  { %v271_v0 = vpop.xlane.xlu1 %270 }
 0x3d9   :  { %v275_v1 = vsub.f32 %v267_v56, %v271_v0 }
 0x3db   :  { %v277_v2 = vmul.f32 1.442695, %v275_v1 }
 0x3dc   :  { %v274_v3 = vpop.xlane.xlu0 %273  ;;  %v293_v4 = vpop.permute.xlu1 %292 }
 0x3dd   :  { %1987 = vpow2.f32 %v277_v2  ;;  %v276_v5 = vsub.f32 %v268_v61, %v274_v3  ;;  %1824 = vmatpush3.bf16.msra.mxu0 %v293_v4  ;;  %v1679_v4 = vld [vmem:[%s2514_s8] ss:$0 sm:$0xff] }
 0x3de   :  { %1835 = vmatprep.subr.bf16.mxu0 %v2043_v14 }
 0x3df   :  { %v279_v6 = vmul.f32 1.442695, %v276_v5 }
 0x3e0   :  { %v399_v21 = vpop.permute.xlu1 %398 }
 0x3e1   :  { %1989 = vpow2.f32 %v279_v6 }
 0x3ea   :  { %v1988_v7 = vpop.eup %1987 }
 0x3eb   :  { %v281_v8 = vsel %vm219_vm2, %v1988_v7, 0.0 }
 0x3ec   :  { %282 = vadd.xlane.f32.xlu0 %v281_v8 }
 0x3ee   :  { %v1990_v9 = vpop.eup %1989 }
 0x3ef   :  { %v284_v10 = vsel %vm219_vm2, %v1990_v9, 0.0 }
 0x3f0   :  { %285 = vadd.xlane.f32.xlu0 %v284_v10 }
 0x406   :  { %400 = vrot.lane.b32.xlu0 %v2206_v43, %s2049_s24 }
 0x475   :  { %v283_v11 = vpop.xlane.xlu0 %282 }
 0x476   :  { %1991 = vrcp.f32 %v283_v11 }
 0x479   :  { %v286_v12 = vpop.xlane.xlu0 %285 }
 0x47a   :  { %1993 = vrcp.f32 %v286_v12 }
 0x47d   :  { %v401_v18 = vpop.permute.xlu0 %400 }
 0x47e   :  { %v406_v20 = vsel %vm219_vm2, %v401_v18, 0 }
 0x483   :  { %v1992_v13 = vpop.eup %1991 }
 0x484   :  { %v289_v16 = vmul.f32 %v1992_v13, %v1988_v7 }
 0x487   :  { %v1994_v15 = vpop.eup %1993 }
 0x488   :  { %v290_v17 = vmul.f32 %v1994_v15, %v1990_v9 }
 0x48a   :  { %v291_v19 = vpack.c.bf16 %v290_v17, %v289_v16 }
 0x48c   :  { %1826 = vmatmul.mubr.msk.bf16.vlgmr.msra.gmra.mxu0 %vm219_vm2, %v291_v19 }
 0x48d   :  { %1836 = vmatpush3.bf16.xpose.msra.mxu0 %v406_v20  ;;  %1837 = vmatprep.mubr.msk.bf16.mxu0 %vm2044_vm1, %v2043_v14 }
 0x48e   :  { %1847 = vmatprep.subr.bf16.mxu0 %v2043_v14 }
 0x494   :  { %1838 = vmatmul.mubr.msk.bf16.vlgmr.msra.gmra.mxu0 %vm219_vm2, %v399_v21 }
 0x495   :  { %1849 = vmatprep.mubr.msk.bf16.mxu0 %vm2044_vm1, %v2043_v14 }
 0x54c   :  { %v332_v23 = vpop.f32.mrf.mxu0 }
 0x54e   :  { %v1827_v24 = vpop.f32.mrf.mxu0 }
 0x550   :  { %v335_v25 = vpop.f32.mrf.mxu0 }
 0x551   :  { %v339_v26 = vpack.c.bf16 %v335_v25, %v332_v23 }
 0x552   :  { %v1828_v27 = vpop.f32.mrf.mxu0 }
 0x553   :  { %1832 = vmatmul.mubr.msk.bf16.vlgmr.msra.gmra.mxu1 %vm219_vm2, %v339_v26  ;;  %v1966_v27 = vld [vmem:[%s2515_s11] sm:$0xff]  }
 0x554   :  { %v442_v28 = vpop.f32.mrf.mxu0  ;;  %1843 = vmatprep.mubr.msk.bf16.mxu1 %vm2044_vm1, %v2043_v14 }
 0x555   :  { %v449_v29 = vsel %vm2222_vm5, %v442_v28, -1e+09 }
 0x556   :  { %v1839_v30 = vpop.f32.mrf.mxu0  ;;  %v451_v33 = vsel %vm219_vm2, %v449_v29, -inf }
 0x557   :  { %452 = vmax.xlane.f32.xlu1 %v451_v33 }
 0x558   :  { %v445_v34 = vpop.f32.mrf.mxu0 }
 0x559   :  { %v450_v35 = vsel %vm2229_vm8, %v445_v34, -1e+09 }
 0x55a   :  { %v1840_v36 = vpop.f32.mrf.mxu0  ;;  %v454_v37 = vsel %vm219_vm2, %v450_v35, -inf }
 0x55b   :  { %455 = vmax.xlane.f32.xlu0 %v454_v37 }
 0x5e0   :  { %v453_v38 = vpop.xlane.xlu1 %452 }
 0x5e1   :  { %v457_v39 = vsub.f32 %v449_v29, %v453_v38  ;;  %v1684_v38 = vld [vmem:[%s2516_s9] ss:$0 sm:$0xff] }
 0x5e3   :  { %v459_v40 = vmul.f32 1.442695, %v457_v39 }
 0x5e4   :  { %v456_v41 = vpop.xlane.xlu0 %455 }
 0x5e5   :  { %1995 = vpow2.f32 %v459_v40  ;;  %v458_v42 = vsub.f32 %v450_v35, %v456_v41 }
 0x5e7   :  { %v461_v44 = vmul.f32 1.442695, %v458_v42  ;;  %v1685_v42 = vld [vmem:[%s2517_s10] ss:$0 sm:$0xff] }
 0x5e9   :  { %1997 = vpow2.f32 %v461_v44 }
 0x5f2   :  { %v1996_v45 = vpop.eup %1995 }
 0x5f3   :  { %v463_v46 = vsel %vm219_vm2, %v1996_v45, 0.0 }
 0x5f4   :  { %464 = vadd.xlane.f32.xlu0 %v463_v46 }
 0x5f6   :  { %v1998_v47 = vpop.eup %1997 }
 0x5f7   :  { %v466_v48 = vsel %vm219_vm2, %v1998_v47, 0.0 }
 0x5f8   :  { %467 = vadd.xlane.f32.xlu1 %v466_v48  ;;  %v1967_v48 = vld [vmem:[%s2518_s13 + $0x18] sm:$0xff]  }
 0x60a   :  { %474 = vrot.lane.b32.xlu0 %v2206_v43, %s2050_s26  ;;  %v1964_v43 = vld [vmem:[%s2513_s7 + $0x8] sm:$0xff]  }
 0x60b   :  { %1848 = vmatpush3.bf16.msra.mxu0 %v1964_v43 }
 0x60c   :  { %1861 = vmatprep.subr.bf16.mxu0 %v2043_v14 }
 0x613   :  { %v383_v49 = vpop.f32.mrf.mxu1 }
 0x614   :  { %v396_v5 = vadd.f32 %v1679_v4, %v383_v49  ;;  %v1968_v49 = vld [vmem:[%s2518_s13 + $0x10] sm:$0xff]  }
 0x615   :  { %v1833_v50 = vpop.f32.mrf.mxu1 }
 0x616   :  { %v1969_v50 = vld [vmem:[%s2518_s13 + $0x8] sm:$0xff]  }
 0x617   :  { %v386_v51 = vpop.f32.mrf.mxu1 }
 0x618   :  { %v397_v9 = vadd.f32 %v1679_v4, %v386_v51  ;;  %v1970_v51 = vld [vmem:[%s2518_s13] sm:$0xff]  }
 0x619   :  { %v1834_v52 = vpop.f32.mrf.mxu1 }
 0x61a   :  { %v1686_v52 = vld [vmem:[%s2519_s12] ss:$0 sm:$0xff] }
 0x67d   :  { %v465_v54 = vpop.xlane.xlu0 %464 }
 0x67e   :  { %1999 = vrcp.f32 %v465_v54 }
 0x681   :  { %v468_v55 = vpop.xlane.xlu1 %467  ;;  %v475_v56 = vpop.permute.xlu0 %474 }
 0x682   :  { %2001 = vrcp.f32 %v468_v55  ;;  %1842 = vmatpush3.bf16.msra.mxu1 %v475_v56 }
 0x683   :  { %1853 = vmatprep.subr.bf16.mxu1 %v2043_v14 }
 0x68b   :  { %v2000_v57 = vpop.eup %1999 }
 0x68c   :  { %v471_v60 = vmul.f32 %v2000_v57, %v1996_v45 }
 0x68f   :  { %v2002_v58 = vpop.eup %2001 }
 0x690   :  { %v472_v61 = vmul.f32 %v2002_v58, %v1998_v47 }
 0x692   :  { %v473_v62 = vpack.c.bf16 %v472_v61, %v471_v60 }
 0x694   :  { %1844 = vmatmul.mubr.msk.bf16.vlgmr.msra.gmra.mxu1 %vm219_vm2, %v473_v62 }
 0x695   :  { %1857 = vmatprep.mubr.msk.bf16.mxu1 %vm2044_vm1, %v2043_v14 }
 0x754   :  { %v514_v63 = vpop.f32.mrf.mxu1 }
 0x756   :  { %v1845_v0 = vpop.f32.mrf.mxu1 }
 0x758   :  { %v517_v1 = vpop.f32.mrf.mxu1 }
 0x759   :  { %v521_v2 = vpack.c.bf16 %v517_v1, %v514_v63 }
 0x75a   :  { %v1846_v3 = vpop.f32.mrf.mxu1 }
 0x75b   :  { %1850 = vmatmul.mubr.msk.bf16.vlgmr.msra.gmra.mxu0 %vm219_vm2, %v521_v2 }
 0x75c   :  { %1869 = vmatprep.mubr.msk.bf16.mxu0 %vm2044_vm1, %v2043_v14  ;;  %1862 = vmatpush3.bf16.msra.mxu0 %v1967_v48  ;;  %v1696_v48 = vld [vmem:[%s2521_s15] ss:$0 sm:$0xff] }
 0x75d   :  { %1863 = vmatprep.subr.bf16.mxu0 %v2043_v14 }
 0x760   :  { %1864 = vmatpush3.bf16.msra.mxu0 %v1968_v49 }
 0x761   :  { %1865 = vmatprep.subr.bf16.mxu0 %v2043_v14 }
 0x764   :  { %1866 = vmatpush3.bf16.msra.mxu0 %v1969_v50 }
 0x765   :  { %1867 = vmatprep.subr.bf16.mxu0 %v2043_v14 }
 0x768   :  { %1868 = vmatpush3.bf16.msra.mxu0 %v1970_v51 }
 0x769   :  { %1887 = vmatprep.subr.bf16.mxu0 %v2043_v14 }
 0x81b   :  { %v565_v6 = vpop.f32.mrf.mxu0 }
 0x81c   :  { %v572_v7 = vadd.f32 %v565_v6, %v396_v5 }
 0x81d   :  { %v1851_v8 = vpop.f32.mrf.mxu0 }
 0x81e   :  { %v574_v10 = vadd.f32 %v572_v7, %v2191_v31 }
 0x81f   :  { %v568_v11 = vpop.f32.mrf.mxu0 }
 0x820   :  { %v573_v12 = vadd.f32 %v568_v11, %v397_v9  ;;  %v578_v13 = vsel %vm74_vm0, %v574_v10, 0.0 }
 0x821   :  { %579 = vadd.xlane.f32.xlu1 %v578_v13  ;;  %v1852_v15 = vpop.f32.mrf.mxu0 }
 0x822   :  { %v575_v16 = vadd.f32 %v573_v12, %v2193_v32  ;;  %v1965_v32 = vld [vmem:[%s2515_s11 + $0x8] sm:$0xff]  }
 0x823   :  { %1854 = vmatpush3.bf16.msra.mxu1 %v1965_v32 }
 0x824   :  { %v581_v17 = vsel %vm74_vm0, %v575_v16, 0.0  ;;  %1855 = vmatprep.subr.bf16.mxu1 %v2043_v14 }
 0x825   :  { %582 = vadd.xlane.f32.xlu1 %v581_v17 }
 0x827   :  { %1856 = vmatpush3.bf16.msra.mxu1 %v1966_v27 }
 0x828   :  { %1873 = vmatprep.subr.bf16.mxu1 %v2043_v14 }
 0x8aa   :  { %v580_v18 = vpop.xlane.xlu1 %579 }
 0x8ab   :  { %v584_v19 = vmul.f32 0.03125, %v580_v18 }
 0x8ad   :  { %v586_v20 = vsub.f32 %v574_v10, %v584_v19 }
 0x8ae   :  { %v583_v21 = vpop.xlane.xlu1 %582 }
 0x8af   :  { %v585_v22 = vmul.f32 0.03125, %v583_v21  ;;  %v588_v23 = vmul.f32 %v586_v20, %v586_v20 }
 0x8b1   :  { %v587_v24 = vsub.f32 %v575_v16, %v585_v22  ;;  %v590_v31 = vsel %vm74_vm0, %v588_v23, 0.0  ;;  %v1690_v16 = vld [vmem:[%s2520_s14] ss:$0 sm:$0xff] }
 0x8b2   :  { %591 = vadd.xlane.f32.xlu1 %v590_v31 }
 0x8b3   :  { %v589_v25 = vmul.f32 %v587_v24, %v587_v24 }
 0x8b5   :  { %v593_v26 = vsel %vm74_vm0, %v589_v25, 0.0 }
 0x8b6   :  { %594 = vadd.xlane.f32.xlu1 %v593_v26 }
 0x93b   :  { %v592_v28 = vpop.xlane.xlu1 %591 }
 0x93c   :  { %v596_v29 = vmul.f32 0.03125, %v592_v28 }
 0x93e   :  { %v598_v30 = vadd.f32 1e-12, %v596_v29 }
 0x93f   :  { %v595_v33 = vpop.xlane.xlu1 %594 }
 0x940   :  { %2003 = vrsqrt.f32 %v598_v30  ;;  %v597_v34 = vmul.f32 0.03125, %v595_v33 }
 0x942   :  { %v599_v35 = vadd.f32 1e-12, %v597_v34 }
 0x944   :  { %2005 = vrsqrt.f32 %v599_v35 }
 0x94d   :  { %v2004_v36 = vpop.eup %2003 }
 0x94e   :  { %v602_v37 = vmul.f32 %v2004_v36, %v586_v20 }
 0x950   :  { %v610_v41 = vmul.f32 %v1684_v38, %v602_v37  ;;  %v1971_v37 = vld [vmem:[%s2539_s0 + $0x18] sm:$0xff]  }
 0x951   :  { %v2006_v39 = vpop.eup %2005 }
 0x952   :  { %v603_v40 = vmul.f32 %v2006_v39, %v587_v24  ;;  %v618_v45 = vadd.f32 %v1685_v42, %v610_v41 }
 0x954   :  { %v611_v44 = vmul.f32 %v1684_v38, %v603_v40  ;;  %v1972_v38 = vld [vmem:[%s2539_s0 + $0x10] sm:$0xff]  }
 0x956   :  { %v619_v46 = vadd.f32 %v1685_v42, %v611_v44 }
 0x958   :  { %v620_v47 = vpack.c.bf16 %v619_v46, %v618_v45 }
 0x95a   :  { %1858 = vmatmul.mubr.msk.bf16.vlgmr.msra.gmra.mxu1 %vm74_vm0, %v620_v47 }
 0x95b   :  { %1877 = vmatprep.mubr.msk.bf16.mxu1 %vm2044_vm1, %v2043_v14  ;;  %1874 = vmatpush3.bf16.msra.mxu1 %v1971_v37 }
 0x95c   :  { %1875 = vmatprep.subr.bf16.mxu1 %v2043_v14 }
 0x95f   :  { %1876 = vmatpush3.bf16.msra.mxu1 %v1972_v38 }
 0x960   :  { %1881 = vmatprep.subr.bf16.mxu1 %v2043_v14 }
 0xa1a   :  { %v681_v54 = vpop.f32.mrf.mxu1 }
 0xa1b   :  { %v682_v55 = vadd.f32 %v1686_v52, %v681_v54 }
 0xa1c   :  { %v1859_v56 = vpop.f32.mrf.mxu1 }
 0xa1d   :  { %v688_v57 = vmul.f32 %v682_v55, %v682_v55 }
 0xa1e   :  { %v684_v58 = vpop.f32.mrf.mxu1 }
 0xa1f   :  { %v690_v60 = vmul.f32 %v688_v57, %v682_v55  ;;  %v685_v61 = vadd.f32 %v1686_v52, %v684_v58  ;;  %v1697_v52 = vld [vmem:[%s2522_s16] ss:$0 sm:$0xff] }
 0xa20   :  { %v1860_v62 = vpop.f32.mrf.mxu1 }
 0xa21   :  { %v692_v43 = vmul.f32 0.044715, %v690_v60  ;;  %v689_v63 = vmul.f32 %v685_v61, %v685_v61  ;;  %v1703_v60 = vld [vmem:[%s2542_s27 + $0x1] ss:$0 sm:$0xff] }
 0xa23   :  { %v694_v0 = vadd.f32 %v692_v43, %v682_v55  ;;  %v691_v1 = vmul.f32 %v689_v63, %v685_v61 }
 0xa25   :  { %v696_v2 = vmul.f32 0.7978846, %v694_v0  ;;  %v693_v3 = vmul.f32 0.044715, %v691_v1 }
 0xa27   :  { %2007 = vtanh.f32 %v696_v2  ;;  %v695_v4 = vadd.f32 %v693_v3, %v685_v61 }
 0xa29   :  { %v697_v5 = vmul.f32 0.7978846, %v695_v4 }
 0xa2b   :  { %2009 = vtanh.f32 %v697_v5 }
 0xa34   :  { %v2008_v6 = vpop.eup %2007 }
 0xa35   :  { %v700_v7 = vadd.f32 1.0, %v2008_v6 }
 0xa37   :  { %v702_v9 = vmul.f32 0.5, %v700_v7 }
 0xa38   :  { %v2010_v8 = vpop.eup %2009 }
 0xa39   :  { %v701_v10 = vadd.f32 1.0, %v2010_v8  ;;  %v704_v12 = vmul.f32 %v702_v9, %v682_v55 }
 0xa3b   :  { %v703_v11 = vmul.f32 0.5, %v701_v10 }
 0xa3d   :  { %v705_v13 = vmul.f32 %v703_v11, %v685_v61 }
 0xa3f   :  { %v706_v15 = vpack.c.bf16 %v705_v13, %v704_v12 }
 0xa41   :  { %1870 = vmatmul.mubr.msk.bf16.vlgmr.msra.gmra.mxu0 %vm746_vm9, %v706_v15 }
 0xa42   :  { %1889 = vmatprep.mubr.msk.bf16.mxu0 %vm2044_vm1, %v2043_v14 }
 0xb01   :  { %v784_v17 = vpop.f32.mrf.mxu0 }
 0xb02   :  { %v785_v18 = vadd.f32 %v1690_v16, %v784_v17 }
 0xb03   :  { %v1871_v19 = vpop.f32.mrf.mxu0 }
 0xb04   :  { %v791_v20 = vadd.f32 %v785_v18, %v618_v45 }
 0xb05   :  { %v787_v21 = vpop.f32.mrf.mxu0 }
 0xb06   :  { %v788_v22 = vadd.f32 %v1690_v16, %v787_v21  ;;  %v795_v23 = vsel %vm74_vm0, %v791_v20, 0.0 }
 0xb07   :  { %796 = vadd.xlane.f32.xlu1 %v795_v23  ;;  %v1872_v24 = vpop.f32.mrf.mxu0 }
 0xb08   :  { %v792_v31 = vadd.f32 %v788_v22, %v619_v46 }
 0xb0a   :  { %v798_v25 = vsel %vm74_vm0, %v792_v31, 0.0 }
 0xb0b   :  { %799 = vadd.xlane.f32.xlu1 %v798_v25 }
 0xb90   :  { %v797_v26 = vpop.xlane.xlu1 %796 }
 0xb91   :  { %v801_v32 = vmul.f32 0.03125, %v797_v26 }
 0xb93   :  { %v803_v27 = vsub.f32 %v791_v20, %v801_v32 }
 0xb94   :  { %v800_v28 = vpop.xlane.xlu1 %799 }
 0xb95   :  { %v802_v29 = vmul.f32 0.03125, %v800_v28  ;;  %v805_v30 = vmul.f32 %v803_v27, %v803_v27 }
 0xb97   :  { %v804_v33 = vsub.f32 %v792_v31, %v802_v29  ;;  %v807_v34 = vsel %vm74_vm0, %v805_v30, 0.0 }
 0xb98   :  { %808 = vadd.xlane.f32.xlu0 %v807_v34  ;;  %v1973_v34 = vld [vmem:[%s2513_s7 + $0x10] sm:$0xff]  }
 0xb99   :  { %v806_v35 = vmul.f32 %v804_v33, %v804_v33 }
 0xb9b   :  { %v810_v36 = vsel %vm74_vm0, %v806_v35, 0.0 }
 0xb9c   :  { %811 = vadd.xlane.f32.xlu1 %v810_v36 }
 0xc21   :  { %v809_v39 = vpop.xlane.xlu0 %808 }
 0xc22   :  { %v813_v40 = vmul.f32 0.03125, %v809_v39 }
 0xc24   :  { %v815_v41 = vadd.f32 1e-12, %v813_v40 }
 0xc25   :  { %v812_v42 = vpop.xlane.xlu1 %811 }
 0xc26   :  { %2011 = vrsqrt.f32 %v815_v41  ;;  %v814_v44 = vmul.f32 0.03125, %v812_v42 }
 0xc28   :  { %v816_v45 = vadd.f32 1e-12, %v814_v44 }
 0xc2a   :  { %2013 = vrsqrt.f32 %v816_v45 }
 0xc33   :  { %v2012_v46 = vpop.eup %2011 }
 0xc34   :  { %v819_v47 = vmul.f32 %v2012_v46, %v803_v27 }
 0xc36   :  { %v827_v51 = vmul.f32 %v1696_v48, %v819_v47 }
 0xc37   :  { %v2014_v49 = vpop.eup %2013 }
 0xc38   :  { %v820_v50 = vmul.f32 %v2014_v49, %v804_v33  ;;  %v2350_v55 = vadd.f32 %v1697_v52, %v827_v51 }
 0xc3a   :  { %v828_v54 = vmul.f32 %v1696_v48, %v820_v50 }
 0xc3c   :  { %v2352_v56 = vadd.f32 %v1697_v52, %v828_v54 }
 0xc3e   :  { %v837_v57 = vpack.c.bf16 %v2352_v56, %v2350_v55 }
 0xc40   :  { %1878 = vmatmul.mubr.msk.bf16.vlgmr.msra.gmra.mxu1 %vm74_vm0, %v837_v57 }
 0xc41   :  { %1883 = vmatprep.mubr.msk.bf16.mxu1 %vm2044_vm1, %v2043_v14 }
 0xd00   :  { %v900_v58 = vpop.f32.mrf.mxu1 }
 0xd01   :  { %v901_v43 = vadd.f32 %v1703_v60, %v900_v58 }
 0xd02   :  { %v1879_v61 = vpop.f32.mrf.mxu1 }
 0xd04   :  { %v903_v62 = vpop.f32.mrf.mxu1 }
 0xd05   :  { %v904_v63 = vadd.f32 %v1703_v60, %v903_v62 }
 0xd06   :  { %v1880_v0 = vpop.f32.mrf.mxu1 }
 0xd07   :  { %v2362_v1 = vpack.c.bf16 %v904_v63, %v901_v43 }
 0xd09   :  { %916 = vrot.lane.b32.xlu1 %v2362_v1, %s2046_s1 }
 0xd7b   :  { %v917_v2 = vpop.permute.xlu1 %916 }
 0xd7c   :  { %v922_v3 = vsel %vm219_vm2, %v917_v2, 0 }
 0xd7d   :  { %1882 = vmatpush3.bf16.xpose.msra.mxu1 %v922_v3 }
 0xd7e   :  { %1893 = vmatprep.subr.bf16.mxu1 %v2043_v14 }
 0xd84   :  { %1884 = vmatmul.mubr.msk.bf16.vlgmr.msra.gmra.mxu1 %vm219_vm2, %v2362_v1 }
 0xd85   :  { %1895 = vmatprep.mubr.msk.bf16.mxu1 %vm2044_vm1, %v2043_v14  ;;  %1894 = vmatpush3.bf16.msra.mxu1 %v1973_v34 }
 0xd86   :  { %1905 = vmatprep.subr.bf16.mxu1 %v2043_v14 }
 0xe44   :  { %v958_v4 = vpop.f32.mrf.mxu1 }
 0xe45   :  { %v965_v5 = vsel %vm2222_vm5, %v958_v4, -1e+09 }
 0xe46   :  { %v1885_v6 = vpop.f32.mrf.mxu1  ;;  %v967_v7 = vsel %vm219_vm2, %v965_v5, -inf }
 0xe47   :  { %968 = vmax.xlane.f32.xlu1 %v967_v7 }
 0xe48   :  { %v961_v8 = vpop.f32.mrf.mxu1 }
 0xe49   :  { %v966_v9 = vsel %vm2229_vm8, %v961_v8, -1e+09 }
 0xe4a   :  { %v1886_v10 = vpop.f32.mrf.mxu1  ;;  %v970_v11 = vsel %vm219_vm2, %v966_v9, -inf }
 0xe4b   :  { %971 = vmax.xlane.f32.xlu0 %v970_v11 }
 0xe58   :  { %1098 = vrot.lane.b32.xlu1 %v2362_v1, %s2049_s24 }
 0xed0   :  { %v969_v12 = vpop.xlane.xlu1 %968 }
 0xed1   :  { %v973_v13 = vsub.f32 %v965_v5, %v969_v12 }
 0xed3   :  { %v975_v15 = vmul.f32 1.442695, %v973_v13 }
 0xed4   :  { %v972_v16 = vpop.xlane.xlu0 %971  ;;  %v1099_v28 = vpop.permute.xlu1 %1098 }
 0xed5   :  { %2015 = vpow2.f32 %v975_v15  ;;  %v974_v17 = vsub.f32 %v966_v9, %v972_v16  ;;  %v1104_v30 = vsel %vm219_vm2, %v1099_v28, 0  ;;  %v1716_v15 = vld [vmem:[%s2514_s8 + $0x1] ss:$0 sm:$0xff] }
 0xed7   :  { %v977_v18 = vmul.f32 1.442695, %v974_v17 }
 0xed9   :  { %2017 = vpow2.f32 %v977_v18 }
 0xee2   :  { %v2016_v19 = vpop.eup %2015 }
 0xee3   :  { %v979_v20 = vsel %vm219_vm2, %v2016_v19, 0.0 }
 0xee4   :  { %980 = vadd.xlane.f32.xlu0 %v979_v20 }
 0xee6   :  { %v2018_v21 = vpop.eup %2017 }
 0xee7   :  { %v982_v22 = vsel %vm219_vm2, %v2018_v21, 0.0 }
 0xee8   :  { %983 = vadd.xlane.f32.xlu0 %v982_v22 }
 0xefe   :  { %990 = vrot.lane.b32.xlu0 %v2362_v1, %s2047_s2 }
 0xf02   :  { %1096 = vrot.lane.b32.xlu0 %v2362_v1, %s2048_s5 }
 0xf6d   :  { %v981_v23 = vpop.xlane.xlu0 %980 }
 0xf6e   :  { %2019 = vrcp.f32 %v981_v23 }
 0xf71   :  { %v984_v24 = vpop.xlane.xlu0 %983 }
 0xf72   :  { %2021 = vrcp.f32 %v984_v24 }
 0xf75   :  { %v991_v31 = vpop.permute.xlu0 %990 }
 0xf76   :  { %1888 = vmatpush3.bf16.msra.mxu0 %v991_v31 }
 0xf77   :  { %1899 = vmatprep.subr.bf16.mxu0 %v2043_v14 }
 0xf79   :  { %v1097_v33 = vpop.permute.xlu0 %1096 }
 0xf7b   :  { %v2020_v25 = vpop.eup %2019 }
 0xf7c   :  { %v987_v32 = vmul.f32 %v2020_v25, %v2016_v19 }
 0xf7f   :  { %v2022_v26 = vpop.eup %2021 }
 0xf80   :  { %v988_v27 = vmul.f32 %v2022_v26, %v2018_v21 }
 0xf82   :  { %v989_v29 = vpack.c.bf16 %v988_v27, %v987_v32 }
 0xf84   :  { %1890 = vmatmul.mubr.msk.bf16.vlgmr.msra.gmra.mxu0 %vm219_vm2, %v989_v29 }
 0xf85   :  { %1900 = vmatpush3.bf16.xpose.msra.mxu0 %v1104_v30  ;;  %1901 = vmatprep.mubr.msk.bf16.mxu0 %vm2044_vm1, %v2043_v14 }
 0xf86   :  { %1911 = vmatprep.subr.bf16.mxu0 %v2043_v14 }
 0xf8c   :  { %1902 = vmatmul.mubr.msk.bf16.vlgmr.msra.gmra.mxu0 %vm219_vm2, %v1097_v33 }
 0xf8d   :  { %1913 = vmatprep.mubr.msk.bf16.mxu0 %vm2044_vm1, %v2043_v14 }
0x1044   :  { %v1030_v35 = vpop.f32.mrf.mxu0 }
0x1046   :  { %v1891_v36 = vpop.f32.mrf.mxu0 }
0x1048   :  { %v1033_v37 = vpop.f32.mrf.mxu0 }
0x1049   :  { %v1037_v38 = vpack.c.bf16 %v1033_v37, %v1030_v35  ;;  %v1976_v37 = vld [vmem:[%s2515_s11 + $0x10] sm:$0xff]  }
0x104a   :  { %v1892_v39 = vpop.f32.mrf.mxu0 }
0x104b   :  { %1896 = vmatmul.mubr.msk.bf16.vlgmr.msra.gmra.mxu1 %vm219_vm2, %v1037_v38 }
0x104c   :  { %v1140_v40 = vpop.f32.mrf.mxu0  ;;  %1907 = vmatprep.mubr.msk.bf16.mxu1 %vm2044_vm1, %v2043_v14 }
0x104d   :  { %v1147_v41 = vsel %vm2222_vm5, %v1140_v40, -1e+09 }
0x104e   :  { %v1903_v42 = vpop.f32.mrf.mxu0  ;;  %v1149_v44 = vsel %vm219_vm2, %v1147_v41, -inf }
0x104f   :  { %1150 = vmax.xlane.f32.xlu0 %v1149_v44 }
0x1050   :  { %v1143_v45 = vpop.f32.mrf.mxu0 }
0x1051   :  { %v1148_v46 = vsel %vm2229_vm8, %v1143_v45, -1e+09 }
0x1052   :  { %v1904_v47 = vpop.f32.mrf.mxu0  ;;  %v1152_v48 = vsel %vm219_vm2, %v1148_v46, -inf }
0x1053   :  { %1153 = vmax.xlane.f32.xlu1 %v1152_v48  ;;  %v1723_v47 = vld [vmem:[%s2516_s9 + $0x1] ss:$0 sm:$0xff] }
0x10d8   :  { %v1151_v49 = vpop.xlane.xlu0 %1150 }
0x10d9   :  { %v1155_v50 = vsub.f32 %v1147_v41, %v1151_v49 }
0x10db   :  { %v1157_v51 = vmul.f32 1.442695, %v1155_v50 }
0x10dc   :  { %v1154_v52 = vpop.xlane.xlu1 %1153 }
0x10dd   :  { %2023 = vpow2.f32 %v1157_v51  ;;  %v1156_v54 = vsub.f32 %v1148_v46, %v1154_v52  ;;  %v1724_v51 = vld [vmem:[%s2517_s10 + $0x1] ss:$0 sm:$0xff] }
0x10df   :  { %v1159_v53 = vmul.f32 1.442695, %v1156_v54 }
0x10e1   :  { %2025 = vpow2.f32 %v1159_v53 }
0x10ea   :  { %v2024_v57 = vpop.eup %2023 }
0x10eb   :  { %v1161_v58 = vsel %vm219_vm2, %v2024_v57, 0.0 }
0x10ec   :  { %1162 = vadd.xlane.f32.xlu0 %v1161_v58  ;;  %v1977_v58 = vld [vmem:[%s2518_s13 + $0x38] sm:$0xff]  }
0x10ee   :  { %v2026_v60 = vpop.eup %2025 }
0x10ef   :  { %v1164_v59 = vsel %vm219_vm2, %v2026_v60, 0.0 }
0x10f0   :  { %1165 = vadd.xlane.f32.xlu0 %v1164_v59  ;;  %v1979_v59 = vld [vmem:[%s2518_s13 + $0x28] sm:$0xff]  }
0x1106   :  { %1172 = vrot.lane.b32.xlu0 %v2362_v1, %s2050_s26  ;;  %v1974_v1 = vld [vmem:[%s2513_s7 + $0x18] sm:$0xff]  }
0x1107   :  { %1912 = vmatpush3.bf16.msra.mxu0 %v1974_v1 }
0x1108   :  { %1925 = vmatprep.subr.bf16.mxu0 %v2043_v14 }
0x110b   :  { %v1081_v61 = vpop.f32.mrf.mxu1 }
0x110c   :  { %v1094_v16 = vadd.f32 %v1716_v15, %v1081_v61  ;;  %v1980_v61 = vld [vmem:[%s2518_s13 + $0x20] sm:$0xff]  }
0x110d   :  { %v1897_v62 = vpop.f32.mrf.mxu1 }
0x110e   :  { %v1730_v62 = vld [vmem:[%s2519_s12 + $0x1] ss:$0 sm:$0xff] }
0x110f   :  { %v1084_v43 = vpop.f32.mrf.mxu1 }
0x1110   :  { %v1095_v20 = vadd.f32 %v1716_v15, %v1084_v43 }
0x1111   :  { %v1898_v63 = vpop.f32.mrf.mxu1 }
0x1175   :  { %v1163_v0 = vpop.xlane.xlu0 %1162 }
0x1176   :  { %2027 = vrcp.f32 %v1163_v0 }
0x1179   :  { %v1166_v2 = vpop.xlane.xlu0 %1165 }
0x117a   :  { %2029 = vrcp.f32 %v1166_v2 }
0x117d   :  { %v1173_v3 = vpop.permute.xlu0 %1172 }
0x117e   :  { %1906 = vmatpush3.bf16.msra.mxu1 %v1173_v3 }
0x117f   :  { %1917 = vmatprep.subr.bf16.mxu1 %v2043_v14 }
0x1183   :  { %v2028_v4 = vpop.eup %2027 }
0x1184   :  { %v1169_v6 = vmul.f32 %v2028_v4, %v2024_v57 }
0x1187   :  { %v2030_v5 = vpop.eup %2029 }
0x1188   :  { %v1170_v7 = vmul.f32 %v2030_v5, %v2026_v60  ;;  %v1978_v60 = vld [vmem:[%s2518_s13 + $0x30] sm:$0xff]  }
0x118a   :  { %v1171_v8 = vpack.c.bf16 %v1170_v7, %v1169_v6 }
0x118c   :  { %1908 = vmatmul.mubr.msk.bf16.vlgmr.msra.gmra.mxu1 %vm219_vm2, %v1171_v8 }
0x118d   :  { %1921 = vmatprep.mubr.msk.bf16.mxu1 %vm2044_vm1, %v2043_v14 }
0x124c   :  { %v1212_v9 = vpop.f32.mrf.mxu1 }
0x124e   :  { %v1909_v10 = vpop.f32.mrf.mxu1 }
0x1250   :  { %v1215_v11 = vpop.f32.mrf.mxu1 }
0x1251   :  { %v1219_v12 = vpack.c.bf16 %v1215_v11, %v1212_v9 }
0x1252   :  { %v1910_v13 = vpop.f32.mrf.mxu1 }
0x1253   :  { %1914 = vmatmul.mubr.msk.bf16.vlgmr.msra.gmra.mxu0 %vm219_vm2, %v1219_v12 }
0x1254   :  { %1933 = vmatprep.mubr.msk.bf16.mxu0 %vm2044_vm1, %v2043_v14  ;;  %1926 = vmatpush3.bf16.msra.mxu0 %v1977_v58 }
0x1255   :  { %1927 = vmatprep.subr.bf16.mxu0 %v2043_v14 }
0x1258   :  { %1928 = vmatpush3.bf16.msra.mxu0 %v1978_v60 }
0x1259   :  { %1929 = vmatprep.subr.bf16.mxu0 %v2043_v14 }
0x125c   :  { %1930 = vmatpush3.bf16.msra.mxu0 %v1979_v59  ;;  %v1752_v59 = vld [vmem:[%s2522_s16 + $0x1] ss:$0 sm:$0xff] }
0x125d   :  { %1931 = vmatprep.subr.bf16.mxu0 %v2043_v14 }
0x1260   :  { %1932 = vmatpush3.bf16.msra.mxu0 %v1980_v61 }
0x1313   :  { %v1263_v17 = vpop.f32.mrf.mxu0 }
0x1314   :  { %v1270_v18 = vadd.f32 %v1263_v17, %v1094_v16 }
0x1315   :  { %v1915_v19 = vpop.f32.mrf.mxu0 }
0x1316   :  { %v1272_v21 = vadd.f32 %v1270_v18, %v2350_v55 }
0x1317   :  { %v1266_v22 = vpop.f32.mrf.mxu0 }
0x1318   :  { %v1271_v23 = vadd.f32 %v1266_v22, %v1095_v20  ;;  %v1278_v24 = vsel %vm74_vm0, %v1272_v21, 0.0 }
0x1319   :  { %1279 = vadd.xlane.f32.xlu1 %v1278_v24  ;;  %v1916_v31 = vpop.f32.mrf.mxu0  ;;  %v1743_v24 = vld [vmem:[%s2520_s14 + $0x1] ss:$0 sm:$0xff] }
0x131a   :  { %v1273_v25 = vadd.f32 %v1271_v23, %v2352_v56  ;;  %v1975_v56 = vld [vmem:[%s2515_s11 + $0x18] sm:$0xff]  }
0x131b   :  { %1918 = vmatpush3.bf16.msra.mxu1 %v1975_v56 }
0x131c   :  { %v1281_v26 = vsel %vm74_vm0, %v1273_v25, 0.0  ;;  %1919 = vmatprep.subr.bf16.mxu1 %v2043_v14 }
0x131d   :  { %1282 = vadd.xlane.f32.xlu1 %v1281_v26 }
0x131f   :  { %1920 = vmatpush3.bf16.msra.mxu1 %v1976_v37 }
0x1320   :  { %1937 = vmatprep.subr.bf16.mxu1 %v2043_v14 }
0x13a2   :  { %v1280_v32 = vpop.xlane.xlu1 %1279 }
0x13a3   :  { %v1284_v27 = vmul.f32 0.03125, %v1280_v32 }
0x13a5   :  { %v1286_v28 = vsub.f32 %v1272_v21, %v1284_v27 }
0x13a6   :  { %v1283_v29 = vpop.xlane.xlu1 %1282 }
0x13a7   :  { %v1285_v30 = vmul.f32 0.03125, %v1283_v29  ;;  %v1288_v33 = vmul.f32 %v1286_v28, %v1286_v28 }
0x13a9   :  { %v1287_v34 = vsub.f32 %v1273_v25, %v1285_v30  ;;  %v1290_v55 = vsel %vm74_vm0, %v1288_v33, 0.0 }
0x13aa   :  { %1291 = vadd.xlane.f32.xlu1 %v1290_v55 }
0x13ab   :  { %v1289_v35 = vmul.f32 %v1287_v34, %v1287_v34 }
0x13ad   :  { %v1293_v36 = vsel %vm74_vm0, %v1289_v35, 0.0 }
0x13ae   :  { %1294 = vadd.xlane.f32.xlu1 %v1293_v36 }
0x1433   :  { %v1292_v38 = vpop.xlane.xlu1 %1291 }
0x1434   :  { %v1296_v39 = vmul.f32 0.03125, %v1292_v38 }
0x1436   :  { %v1298_v40 = vadd.f32 1e-12, %v1296_v39 }
0x1437   :  { %v1295_v41 = vpop.xlane.xlu1 %1294 }
0x1438   :  { %2031 = vrsqrt.f32 %v1298_v40  ;;  %v1297_v42 = vmul.f32 0.03125, %v1295_v41 }
0x143a   :  { %v1299_v44 = vadd.f32 1e-12, %v1297_v42 }
0x143c   :  { %2033 = vrsqrt.f32 %v1299_v44  ;;  %v1981_v44 = vld [vmem:[%s2523_s17 + $0x8] sm:$0xff]  }
0x1445   :  { %v2032_v45 = vpop.eup %2031 }
0x1446   :  { %v1302_v46 = vmul.f32 %v2032_v45, %v1286_v28  ;;  %v1982_v45 = vld [vmem:[%s2523_s17] sm:$0xff]  }
0x1448   :  { %v1310_v50 = vmul.f32 %v1723_v47, %v1302_v46 }
0x1449   :  { %v2034_v48 = vpop.eup %2033 }
0x144a   :  { %v1303_v49 = vmul.f32 %v2034_v48, %v1287_v34  ;;  %v1318_v54 = vadd.f32 %v1724_v51, %v1310_v50 }
0x144c   :  { %v1311_v52 = vmul.f32 %v1723_v47, %v1303_v49 }
0x144e   :  { %v1319_v53 = vadd.f32 %v1724_v51, %v1311_v52 }
0x1450   :  { %v1320_v57 = vpack.c.bf16 %v1319_v53, %v1318_v54 }
0x1452   :  { %1922 = vmatmul.mubr.msk.bf16.vlgmr.msra.gmra.mxu1 %vm74_vm0, %v1320_v57 }
0x1453   :  { %1941 = vmatprep.mubr.msk.bf16.mxu1 %vm2044_vm1, %v2043_v14  ;;  %1938 = vmatpush3.bf16.msra.mxu1 %v1981_v44 }
0x1454   :  { %1939 = vmatprep.subr.bf16.mxu1 %v2043_v14 }
0x1457   :  { %1940 = vmatpush3.bf16.msra.mxu1 %v1982_v45 }
0x1458   :  { %1945 = vmatprep.subr.bf16.mxu1 %v2043_v14 }
0x1512   :  { %v1383_v43 = vpop.f32.mrf.mxu1 }
0x1513   :  { %v1384_v63 = vadd.f32 %v1730_v62, %v1383_v43 }
0x1514   :  { %v1923_v0 = vpop.f32.mrf.mxu1 }
0x1515   :  { %v1390_v2 = vmul.f32 %v1384_v63, %v1384_v63  ;;  %v1753_v0 = vld [vmem:[%s2524_s18] ss:$0 sm:$0xff] }
0x1516   :  { %v1386_v3 = vpop.f32.mrf.mxu1 }
0x1517   :  { %v1392_v4 = vmul.f32 %v1390_v2, %v1384_v63  ;;  %v1387_v5 = vadd.f32 %v1730_v62, %v1386_v3 }
0x1518   :  { %v1924_v6 = vpop.f32.mrf.mxu1 }
0x1519   :  { %v1394_v7 = vmul.f32 0.044715, %v1392_v4  ;;  %v1391_v8 = vmul.f32 %v1387_v5, %v1387_v5 }
0x151b   :  { %v1396_v1 = vadd.f32 %v1394_v7, %v1384_v63  ;;  %v1393_v9 = vmul.f32 %v1391_v8, %v1387_v5 }
0x151d   :  { %v1398_v10 = vmul.f32 0.7978846, %v1396_v1  ;;  %v1395_v11 = vmul.f32 0.044715, %v1393_v9 }
0x151f   :  { %2035 = vtanh.f32 %v1398_v10  ;;  %v1397_v12 = vadd.f32 %v1395_v11, %v1387_v5  ;;  %v1615_v11 = vstv %s2526_s20 }
0x1521   :  { %v1399_v13 = vmul.f32 0.7978846, %v1397_v12 }
0x1523   :  { %2037 = vtanh.f32 %v1399_v13 }
0x152c   :  { %v2036_v15 = vpop.eup %2035 }
0x152d   :  { %v1402_v16 = vadd.f32 1.0, %v2036_v15 }
0x152f   :  { %v1404_v18 = vmul.f32 0.5, %v1402_v16 }
0x1530   :  { %v2038_v17 = vpop.eup %2037 }
0x1531   :  { %v1403_v19 = vadd.f32 1.0, %v2038_v17  ;;  %v1406_v21 = vmul.f32 %v1404_v18, %v1384_v63 }
0x1533   :  { %v1405_v20 = vmul.f32 0.5, %v1403_v19 }
0x1535   :  { %v1407_v22 = vmul.f32 %v1405_v20, %v1387_v5 }
0x1537   :  { %v1408_v23 = vpack.c.bf16 %v1407_v22, %v1406_v21 }
0x1539   :  { %1934 = vmatmul.mubr.msk.bf16.vlgmr.msra.gmra.mxu0 %vm746_vm9, %v1408_v23 }
0x15f9   :  { %v1487_v31 = vpop.f32.mrf.mxu0 }
0x15fa   :  { %v1488_v25 = vadd.f32 %v1743_v24, %v1487_v31 }
0x15fb   :  { %v1935_v26 = vpop.f32.mrf.mxu0 }
0x15fc   :  { %v1494_v32 = vadd.f32 %v1488_v25, %v1318_v54 }
0x15fd   :  { %v1490_v27 = vpop.f32.mrf.mxu0 }
0x15fe   :  { %v1491_v28 = vadd.f32 %v1743_v24, %v1490_v27  ;;  %v1500_v29 = vsel %vm74_vm0, %v1494_v32, 0.0 }
0x15ff   :  { %1501 = vadd.xlane.f32.xlu1 %v1500_v29  ;;  %v1936_v30 = vpop.f32.mrf.mxu0 }
0x1600   :  { %v1495_v33 = vadd.f32 %v1491_v28, %v1319_v53  ;;  %v1751_v53 = vld [vmem:[%s2521_s15 + $0x1] ss:$0 sm:$0xff] }
0x1602   :  { %v1503_v34 = vsel %vm74_vm0, %v1495_v33, 0.0 }
0x1603   :  { %1504 = vadd.xlane.f32.xlu0 %v1503_v34 }
0x1688   :  { %v1502_v55 = vpop.xlane.xlu1 %1501 }
0x1689   :  { %v1506_v35 = vmul.f32 0.03125, %v1502_v55 }
0x168b   :  { %v1508_v36 = vsub.f32 %v1494_v32, %v1506_v35 }
0x168c   :  { %v1505_v56 = vpop.xlane.xlu0 %1504 }
0x168d   :  { %v1507_v37 = vmul.f32 0.03125, %v1505_v56  ;;  %v1510_v38 = vmul.f32 %v1508_v36, %v1508_v36 }
0x168f   :  { %v1509_v39 = vsub.f32 %v1495_v33, %v1507_v37  ;;  %v1512_v40 = vsel %vm74_vm0, %v1510_v38, 0.0 }
0x1690   :  { %1513 = vadd.xlane.f32.xlu1 %v1512_v40 }
0x1691   :  { %v1511_v41 = vmul.f32 %v1509_v39, %v1509_v39 }
0x1693   :  { %v1515_v42 = vsel %vm74_vm0, %v1511_v41, 0.0 }
0x1694   :  { %1516 = vadd.xlane.f32.xlu1 %v1515_v42 }
0x1719   :  { %v1514_v46 = vpop.xlane.xlu1 %1513 }
0x171a   :  { %v1518_v47 = vmul.f32 0.03125, %v1514_v46 }
0x171c   :  { %v1520_v48 = vadd.f32 1e-12, %v1518_v47 }
0x171d   :  { %v1517_v49 = vpop.xlane.xlu1 %1516 }
0x171e   :  { %2039 = vrsqrt.f32 %v1520_v48  ;;  %v1519_v50 = vmul.f32 0.03125, %v1517_v49 }
0x1720   :  { %v1521_v51 = vadd.f32 1e-12, %v1519_v50 }
0x1722   :  { %2041 = vrsqrt.f32 %v1521_v51 }
0x172b   :  { %v2040_v52 = vpop.eup %2039 }
0x172c   :  { %v1524_v54 = vmul.f32 %v2040_v52, %v1508_v36 }
0x172e   :  { %v1532_v60 = vmul.f32 %v1751_v53, %v1524_v54 }
0x172f   :  { %v2042_v57 = vpop.eup %2041 }
0x1730   :  { %v1525_v58 = vmul.f32 %v2042_v57, %v1509_v39  ;;  %v1540_v62 = vadd.f32 %v1752_v59, %v1532_v60 }
0x1732   :  { %v1533_v61 = vmul.f32 %v1751_v53, %v1525_v58 }
0x1734   :  { %v1541_v43 = vadd.f32 %v1752_v59, %v1533_v61 }
0x1736   :  { %v1542_v63 = vpack.c.bf16 %v1541_v43, %v1540_v62 }
0x1738   :  { %1942 = vmatmul.mubr.msk.bf16.vlgmr.msra.gmra.mxu1 %vm74_vm0, %v1542_v63 }
0x1739   :  { %1947 = vmatprep.mubr.msk.bf16.mxu1 %vm2044_vm1, %v2043_v14  ;;  %v1612_v14 = vld [vmem:[%s2525_s19] sm:$0x1] }
0x17f8   :  { %v1603_v2 = vpop.f32.mrf.mxu1 }
0x17f9   :  { %v1604_v4 = vadd.f32 %v1753_v0, %v1603_v2 }
0x17fa   :  { %v1943_v3 = vpop.f32.mrf.mxu1 }
0x17fb   :  { %v1610_v8 = vmax.f32 %v1604_v4, 0.0 }
0x17fc   :  { %v1606_v5 = vpop.f32.mrf.mxu1 }
0x17fd   :  { %v1607_v6 = vadd.f32 %v1753_v0, %v1606_v5 }
0x17fe   :  { %v1944_v7 = vpop.f32.mrf.mxu1 }
0x17ff   :  { %v1611_v1 = vmax.f32 %v1607_v6, 0.0 }
0x1801   :  { %v1613_v9 = vpack.c.bf16 %v1611_v1, %v1610_v8 }
0x1803   :  { %v1620_v10 = vsel %vm74_vm0, %v1613_v9, 0 }
0x1804   :  { %1946 = vmatpush3.bf16.xpose.msra.mxu1 %v1620_v10 }
0x180b   :  { %1948 = vmatmul.mubr.msk.bf16.vlgmr.msra.gmra.mxu1 %vm74_vm0, %v1612_v14 }
0x18cb   :  { %v1656_v12 = vpop.f32.mrf.mxu1 }
0x18cc   :  { %v1657_v13 = vadd.f32 %v1656_v12, %v1615_v11 }
0x18cd   :  { %v1949_v15 = vpop.f32.mrf.mxu1 }
0x18ce   :  { %1663 = vst.msk [vmem:[%s2527_s21] sm:$0x1] %vm1662_vm10, %v1657_v13 }
0x18cf   :  { %v1659_v16 = vpop.f32.mrf.mxu1 }
0x18d1   :  { %v1950_v17 = vpop.f32.mrf.mxu1 }

</bundles_post_ra>
